<compile_context>
chip_gen: v6e
topology: v6e:2x2x1
jax: 0.10.0
libtpu: 0.0.40
codegen_flags: <defaults>
</compile_context>

<pallas_src>
import jax
import jax.numpy as jnp
from jax.experimental import pallas as pl
from jax.experimental.pallas import tpu as pltpu


# ------------------------- fused forward kernel factory -------------------------
def _make_fused_kernel(T, Bp, H, V, num_layers):
    TBp = T * Bp

    def kernel(*refs):
        ids_ref = refs[0]            # (TBp, 1)  int32
        emb_proj0_ref = refs[1]      # (V, 4H)   = emb @ W_ih0^T + b0  (bias folded)
        w_hh_ref = refs[2]           # (L, H, 4H)
        if num_layers > 1:
            wihb_rest_ref = refs[3]  # (L-1, H+1, 4H)  rows [0:H]=W_ih^T, row H = bias
            lin_wb_ref = refs[4]     # (H+1, Vp)       rows [0:H]=W^T,    row H = bias
            out_ref = refs[5]        # (TBp, Vp)
        else:
            lin_wb_ref = refs[3]
            out_ref = refs[4]

        # ---- Embedding fused with layer-0 input projection ----
        # one-hot(ids) @ (emb @ W_ih0^T + b0); one-hot rows sum to 1 so b0 is folded.
        ids = ids_ref[...]                                           # (TBp, 1)
        lane_iota = jax.lax.broadcasted_iota(jnp.int32, (TBp, V), 1)
        onehot = (lane_iota == ids).astype(jnp.float32)              # (TBp, V)
        gx = jnp.dot(onehot, emb_proj0_ref[...],
                     preferred_element_type=jnp.float32)             # (TBp, 4H)

        cur = None
        # ---- Stacked LSTM; time recurrence fully unrolled (T static, small) ----
        for l in range(num_layers):
            if l > 0:
                blk = wihb_rest_ref[l - 1]                           # (H+1, 4H)
                w_ih = blk[:H, :]
                b = blk[H:H + 1, :]
                # One MXU call for the input projection of all T timesteps.
                gx = jnp.dot(cur, w_ih, preferred_element_type=jnp.float32) + b

            w_hh = w_hh_ref[l]                                       # (H, 4H)

            h = jnp.zeros((Bp, H), jnp.float32)
            c = jnp.zeros((Bp, H), jnp.float32)
            hs = []  # register-resident per-step hidden states (<=1 vreg each)
            for t in range(T):
                gates = gx[t * Bp:(t + 1) * Bp, :] + jnp.dot(
                    h, w_hh, preferred_element_type=jnp.float32)     # (Bp, 4H)
                # Full-width activations (2 EUP ops), then static lane slices.
                sig = jax.nn.sigmoid(gates)
                tnh = jnp.tanh(gates)
                i_g = sig[:, 0:H]
                f_g = sig[:, H:2 * H]
                g_g = tnh[:, 2 * H:3 * H]
                o_g = sig[:, 3 * H:4 * H]
                c = f_g * c + i_g * g_g
                h = o_g * jnp.tanh(c)
                hs.append(h)
            cur = jnp.concatenate(hs, axis=0)                        # (TBp, H)

        # Dropout with p=0.0 is the identity.
        # ---- Output projection: lane-dense (vocab padded to 128 lanes) ----
        lin_w = lin_wb_ref[:H, :]                                    # (H, Vp)
        lin_b = lin_wb_ref[H:H + 1, :]                               # (1, Vp)
        out_ref[...] = (
            jnp.dot(cur, lin_w, preferred_element_type=jnp.float32) + lin_b
        )

    return kernel


# --------------------------------- model forward ---------------------------------
def model_forward(X, params):
    """X: (T, B) int token ids -> logits (T, B, vocab_size)."""
    # TODO(synk): X_lens (pack_padded_sequence), hc_in, and return_hc paths of the
    # PyTorch module are not implemented; this is the default forward(X) path.
    T, B = X.shape
    emb = params["embedding"]
    V, _E = emb.shape
    H = params["lstm"][0]["w_hh_t"].shape[0]
    num_layers = len(params["lstm"])

    Bp = ((B + 7) // 8) * 8            # pad batch to a full 8-sublane tile
    TBp = T * Bp
    Vp = ((V + 127) // 128) * 128      # pad vocab dim to a multiple of 128 lanes

    # Padded batch rows use token id 0 (valid); they are sliced off at the end.
    ids = (jnp.zeros((T, Bp), jnp.int32)
           .at[:, :B].set(X.astype(jnp.int32))
           .reshape(TBp, 1))

    # Fold embedding lookup + layer-0 input projection + layer-0 bias into one table.
    l0 = params["lstm"][0]
    emb_proj0 = emb @ l0["w_ih_t"] + l0["b"]                         # (V, 4H)

    w_hh_all = jnp.stack([layer["w_hh_t"] for layer in params["lstm"]], axis=0)

    inputs = [ids, emb_proj0, w_hh_all]
    if num_layers > 1:
        wihb_rest = jnp.stack(
            [jnp.concatenate([layer["w_ih_t"], layer["b"]], axis=0)
             for layer in params["lstm"][1:]], axis=0)               # (L-1, H+1, 4H)
        inputs.append(wihb_rest)

    lin_w_pad = jnp.zeros((H, Vp), jnp.float32).at[:, :V].set(params["lin_w_t"])
    lin_b_pad = jnp.zeros((1, Vp), jnp.float32).at[:, :V].set(params["lin_b"])
    lin_wb = jnp.concatenate([lin_w_pad, lin_b_pad], axis=0)         # (H+1, Vp)
    inputs.append(lin_wb)

    # Single invocation (no grid); whole arrays live in VMEM (<0.5 MiB total).
    # NOTE(v7x): only 1 of 2 TensorCores used; fine at these sizes — shard batch
    # over a leading "parallel" grid axis only if batch grows.
    logits_pad = pl.pallas_call(
        _make_fused_kernel(T, Bp, H, V, num_layers),
        out_shape=jax.ShapeDtypeStruct((TBp, Vp), jnp.float32),
        in_specs=[pl.BlockSpec(memory_space=pltpu.MemorySpace.VMEM) for _ in inputs],
        out_specs=pl.BlockSpec(memory_space=pltpu.MemorySpace.VMEM),
    )(*inputs)

    return logits_pad.reshape(T, Bp, Vp)[:, :B, :V]


# ---------------------------------- parameters ------------------------------------
def init_params(key, vocab_size, emb_dim, hidden_dim, num_layers):
    keys = jax.random.split(key, 3 + 4 * num_layers)
    k_emb, k_lw, k_lb = keys[0], keys[1], keys[2]
    params = {
        "embedding": jax.random.normal(k_emb, (vocab_size, emb_dim), jnp.float32) * 0.1,
        "lin_w_t": jax.random.normal(k_lw, (hidden_dim, vocab_size), jnp.float32) * 0.1,
        "lin_b": jax.random.normal(k_lb, (1, vocab_size), jnp.float32) * 0.1,
        "lstm": [],
    }
    for l in range(num_layers):
        in_dim = emb_dim if l == 0 else hidden_dim
        k0, k1, k2, k3 = keys[3 + 4 * l: 3 + 4 * (l + 1)]
        # Stored pre-transposed (as x @ W^T); PyTorch combines b_ih + b_hh -> one bias.
        params["lstm"].append({
            "w_ih_t": jax.random.normal(k0, (in_dim, 4 * hidden_dim), jnp.float32) * 0.1,
            "w_hh_t": jax.random.normal(k1, (hidden_dim, 4 * hidden_dim), jnp.float32) * 0.1,
            "b": (jax.random.normal(k2, (1, 4 * hidden_dim), jnp.float32) * 0.1
                  + jax.random.normal(k3, (1, 4 * hidden_dim), jnp.float32) * 0.1),
        })
    return params


if __name__ == "__main__":
    vocab_size = 50
    emb_dim = 16
    rnn_hidden_dim = 32
    rnn_num_layers = 2
    seq_len = 8
    batch = 4

    key = jax.random.PRNGKey(0)
    k_params, k_x = jax.random.split(key)
    params = init_params(k_params, vocab_size, emb_dim, rnn_hidden_dim, rnn_num_layers)

    X = jax.random.randint(k_x, (seq_len, batch), 0, vocab_size, dtype=jnp.int32)

    logits = jax.jit(model_forward)(X, params)
    jax.block_until_ready(logits)
    assert logits.shape == (seq_len, batch, vocab_size)
    print("KERNEL_OK")
</pallas_src>

<mosaic_0001>
module attributes {stable_mosaic.version = 11 : i64} {
  func.func @kernel(%arg0: memref<64x1xi32, #tpu.memory_space<vmem>>, %arg1: memref<50x128xf32, #tpu.memory_space<vmem>>, %arg2: memref<2x32x128xf32, #tpu.memory_space<vmem>>, %arg3: memref<1x33x128xf32, #tpu.memory_space<vmem>>, %arg4: memref<33x128xf32, #tpu.memory_space<vmem>>, %arg5: memref<64x128xf32, #tpu.memory_space<vmem>>) attributes {dimension_semantics = [], scalar_prefetch = 0 : i64, scratch_operands = 0 : i64, tpu.core_type = #tpu.core_type<tc>} {
    %c0 = arith.constant 0 : index
    %c0_0 = arith.constant 0 : index
    %0 = vector.load %arg0[%c0, %c0_0] : memref<64x1xi32, #tpu.memory_space<vmem>>, vector<64x1xi32>
    %1 = tpu.iota {dimensions = array<i32: 1>} : vector<64x50xi32>
    %2 = vector.broadcast %0 : vector<64x1xi32> to vector<64x50xi32>
    %3 = arith.cmpi eq, %1, %2 : vector<64x50xi32>
    %4 = arith.extui %3 : vector<64x50xi1> to vector<64x50xi32>
    %5 = arith.sitofp %4 : vector<64x50xi32> to vector<64x50xf32>
    %c0_1 = arith.constant 0 : index
    %c0_2 = arith.constant 0 : index
    %6 = vector.load %arg1[%c0_1, %c0_2] : memref<50x128xf32, #tpu.memory_space<vmem>>, vector<50x128xf32>
    %cst = arith.constant dense<0.000000e+00> : vector<64x128xf32>
    %7 = tpu.matmul %5, %6, %cst {dimension_numbers = #tpu.dot_dimension_numbers<[1], [0], [0], [1], [0, 0, 1, 1], [], []>} : vector<64x50xf32>, vector<50x128xf32>, vector<64x128xf32> -> vector<64x128xf32>
    %c0_3 = arith.constant 0 : index
    %c0_4 = arith.constant 0 : index
    %c0_5 = arith.constant 0 : index
    %8 = vector.load %arg2[%c0_3, %c0_4, %c0_5] : memref<2x32x128xf32, #tpu.memory_space<vmem>>, vector<1x32x128xf32>
    %9 = vector.shape_cast %8 : vector<1x32x128xf32> to vector<32x128xf32>
    %cst_6 = arith.constant 0.000000e+00 : f32
    %10 = vector.broadcast %cst_6 : f32 to vector<8x32xf32>
    %cst_7 = arith.constant 0.000000e+00 : f32
    %11 = vector.broadcast %cst_7 : f32 to vector<8x32xf32>
    %12 = vector.extract_strided_slice %7 {offsets = [0, 0], sizes = [8, 128], strides = [1, 1]} : vector<64x128xf32> to vector<8x128xf32>
    %cst_8 = arith.constant dense<0.000000e+00> : vector<8x128xf32>
    %13 = tpu.matmul %10, %9, %cst_8 {dimension_numbers = #tpu.dot_dimension_numbers<[1], [0], [0], [1], [0, 0, 1, 1], [], []>} : vector<8x32xf32>, vector<32x128xf32>, vector<8x128xf32> -> vector<8x128xf32>
    %14 = arith.addf %12, %13 : vector<8x128xf32>
    %15 = arith.negf %14 : vector<8x128xf32>
    %16 = math.exp %15 : vector<8x128xf32>
    %cst_9 = arith.constant 1.000000e+00 : f32
    %17 = vector.broadcast %cst_9 : f32 to vector<8x128xf32>
    %18 = arith.addf %17, %16 : vector<8x128xf32>
    %19 = arith.divf %17, %18 : vector<8x128xf32>
    %20 = math.tanh %14 : vector<8x128xf32>
    %21 = vector.extract_strided_slice %19 {offsets = [0, 0], sizes = [8, 32], strides = [1, 1]} : vector<8x128xf32> to vector<8x32xf32>
    %22 = vector.extract_strided_slice %19 {offsets = [0, 32], sizes = [8, 32], strides = [1, 1]} : vector<8x128xf32> to vector<8x32xf32>
    %23 = vector.extract_strided_slice %20 {offsets = [0, 64], sizes = [8, 32], strides = [1, 1]} : vector<8x128xf32> to vector<8x32xf32>
    %24 = vector.extract_strided_slice %19 {offsets = [0, 96], sizes = [8, 32], strides = [1, 1]} : vector<8x128xf32> to vector<8x32xf32>
    %25 = arith.mulf %22, %11 : vector<8x32xf32>
    %26 = arith.mulf %21, %23 : vector<8x32xf32>
    %27 = arith.addf %25, %26 : vector<8x32xf32>
    %28 = math.tanh %27 : vector<8x32xf32>
    %29 = arith.mulf %24, %28 : vector<8x32xf32>
    %30 = vector.extract_strided_slice %7 {offsets = [8, 0], sizes = [8, 128], strides = [1, 1]} : vector<64x128xf32> to vector<8x128xf32>
    %cst_10 = arith.constant dense<0.000000e+00> : vector<8x128xf32>
    %31 = tpu.matmul %29, %9, %cst_10 {dimension_numbers = #tpu.dot_dimension_numbers<[1], [0], [0], [1], [0, 0, 1, 1], [], []>} : vector<8x32xf32>, vector<32x128xf32>, vector<8x128xf32> -> vector<8x128xf32>
    %32 = arith.addf %30, %31 : vector<8x128xf32>
    %33 = arith.negf %32 : vector<8x128xf32>
    %34 = math.exp %33 : vector<8x128xf32>
    %cst_11 = arith.constant 1.000000e+00 : f32
    %35 = vector.broadcast %cst_11 : f32 to vector<8x128xf32>
    %36 = arith.addf %35, %34 : vector<8x128xf32>
    %37 = arith.divf %35, %36 : vector<8x128xf32>
    %38 = math.tanh %32 : vector<8x128xf32>
    %39 = vector.extract_strided_slice %37 {offsets = [0, 0], sizes = [8, 32], strides = [1, 1]} : vector<8x128xf32> to vector<8x32xf32>
    %40 = vector.extract_strided_slice %37 {offsets = [0, 32], sizes = [8, 32], strides = [1, 1]} : vector<8x128xf32> to vector<8x32xf32>
    %41 = vector.extract_strided_slice %38 {offsets = [0, 64], sizes = [8, 32], strides = [1, 1]} : vector<8x128xf32> to vector<8x32xf32>
    %42 = vector.extract_strided_slice %37 {offsets = [0, 96], sizes = [8, 32], strides = [1, 1]} : vector<8x128xf32> to vector<8x32xf32>
    %43 = arith.mulf %40, %27 : vector<8x32xf32>
    %44 = arith.mulf %39, %41 : vector<8x32xf32>
    %45 = arith.addf %43, %44 : vector<8x32xf32>
    %46 = math.tanh %45 : vector<8x32xf32>
    %47 = arith.mulf %42, %46 : vector<8x32xf32>
    %48 = vector.extract_strided_slice %7 {offsets = [16, 0], sizes = [8, 128], strides = [1, 1]} : vector<64x128xf32> to vector<8x128xf32>
    %cst_12 = arith.constant dense<0.000000e+00> : vector<8x128xf32>
    %49 = tpu.matmul %47, %9, %cst_12 {dimension_numbers = #tpu.dot_dimension_numbers<[1], [0], [0], [1], [0, 0, 1, 1], [], []>} : vector<8x32xf32>, vector<32x128xf32>, vector<8x128xf32> -> vector<8x128xf32>
    %50 = arith.addf %48, %49 : vector<8x128xf32>
    %51 = arith.negf %50 : vector<8x128xf32>
    %52 = math.exp %51 : vector<8x128xf32>
    %cst_13 = arith.constant 1.000000e+00 : f32
    %53 = vector.broadcast %cst_13 : f32 to vector<8x128xf32>
    %54 = arith.addf %53, %52 : vector<8x128xf32>
    %55 = arith.divf %53, %54 : vector<8x128xf32>
    %56 = math.tanh %50 : vector<8x128xf32>
    %57 = vector.extract_strided_slice %55 {offsets = [0, 0], sizes = [8, 32], strides = [1, 1]} : vector<8x128xf32> to vector<8x32xf32>
    %58 = vector.extract_strided_slice %55 {offsets = [0, 32], sizes = [8, 32], strides = [1, 1]} : vector<8x128xf32> to vector<8x32xf32>
    %59 = vector.extract_strided_slice %56 {offsets = [0, 64], sizes = [8, 32], strides = [1, 1]} : vector<8x128xf32> to vector<8x32xf32>
    %60 = vector.extract_strided_slice %55 {offsets = [0, 96], sizes = [8, 32], strides = [1, 1]} : vector<8x128xf32> to vector<8x32xf32>
    %61 = arith.mulf %58, %45 : vector<8x32xf32>
    %62 = arith.mulf %57, %59 : vector<8x32xf32>
    %63 = arith.addf %61, %62 : vector<8x32xf32>
    %64 = math.tanh %63 : vector<8x32xf32>
    %65 = arith.mulf %60, %64 : vector<8x32xf32>
    %66 = vector.extract_strided_slice %7 {offsets = [24, 0], sizes = [8, 128], strides = [1, 1]} : vector<64x128xf32> to vector<8x128xf32>
    %cst_14 = arith.constant dense<0.000000e+00> : vector<8x128xf32>
    %67 = tpu.matmul %65, %9, %cst_14 {dimension_numbers = #tpu.dot_dimension_numbers<[1], [0], [0], [1], [0, 0, 1, 1], [], []>} : vector<8x32xf32>, vector<32x128xf32>, vector<8x128xf32> -> vector<8x128xf32>
    %68 = arith.addf %66, %67 : vector<8x128xf32>
    %69 = arith.negf %68 : vector<8x128xf32>
    %70 = math.exp %69 : vector<8x128xf32>
    %cst_15 = arith.constant 1.000000e+00 : f32
    %71 = vector.broadcast %cst_15 : f32 to vector<8x128xf32>
    %72 = arith.addf %71, %70 : vector<8x128xf32>
    %73 = arith.divf %71, %72 : vector<8x128xf32>
    %74 = math.tanh %68 : vector<8x128xf32>
    %75 = vector.extract_strided_slice %73 {offsets = [0, 0], sizes = [8, 32], strides = [1, 1]} : vector<8x128xf32> to vector<8x32xf32>
    %76 = vector.extract_strided_slice %73 {offsets = [0, 32], sizes = [8, 32], strides = [1, 1]} : vector<8x128xf32> to vector<8x32xf32>
    %77 = vector.extract_strided_slice %74 {offsets = [0, 64], sizes = [8, 32], strides = [1, 1]} : vector<8x128xf32> to vector<8x32xf32>
    %78 = vector.extract_strided_slice %73 {offsets = [0, 96], sizes = [8, 32], strides = [1, 1]} : vector<8x128xf32> to vector<8x32xf32>
    %79 = arith.mulf %76, %63 : vector<8x32xf32>
    %80 = arith.mulf %75, %77 : vector<8x32xf32>
    %81 = arith.addf %79, %80 : vector<8x32xf32>
    %82 = math.tanh %81 : vector<8x32xf32>
    %83 = arith.mulf %78, %82 : vector<8x32xf32>
    %84 = vector.extract_strided_slice %7 {offsets = [32, 0], sizes = [8, 128], strides = [1, 1]} : vector<64x128xf32> to vector<8x128xf32>
    %cst_16 = arith.constant dense<0.000000e+00> : vector<8x128xf32>
    %85 = tpu.matmul %83, %9, %cst_16 {dimension_numbers = #tpu.dot_dimension_numbers<[1], [0], [0], [1], [0, 0, 1, 1], [], []>} : vector<8x32xf32>, vector<32x128xf32>, vector<8x128xf32> -> vector<8x128xf32>
    %86 = arith.addf %84, %85 : vector<8x128xf32>
    %87 = arith.negf %86 : vector<8x128xf32>
    %88 = math.exp %87 : vector<8x128xf32>
    %cst_17 = arith.constant 1.000000e+00 : f32
    %89 = vector.broadcast %cst_17 : f32 to vector<8x128xf32>
    %90 = arith.addf %89, %88 : vector<8x128xf32>
    %91 = arith.divf %89, %90 : vector<8x128xf32>
    %92 = math.tanh %86 : vector<8x128xf32>
    %93 = vector.extract_strided_slice %91 {offsets = [0, 0], sizes = [8, 32], strides = [1, 1]} : vector<8x128xf32> to vector<8x32xf32>
    %94 = vector.extract_strided_slice %91 {offsets = [0, 32], sizes = [8, 32], strides = [1, 1]} : vector<8x128xf32> to vector<8x32xf32>
    %95 = vector.extract_strided_slice %92 {offsets = [0, 64], sizes = [8, 32], strides = [1, 1]} : vector<8x128xf32> to vector<8x32xf32>
    %96 = vector.extract_strided_slice %91 {offsets = [0, 96], sizes = [8, 32], strides = [1, 1]} : vector<8x128xf32> to vector<8x32xf32>
    %97 = arith.mulf %94, %81 : vector<8x32xf32>
    %98 = arith.mulf %93, %95 : vector<8x32xf32>
    %99 = arith.addf %97, %98 : vector<8x32xf32>
    %100 = math.tanh %99 : vector<8x32xf32>
    %101 = arith.mulf %96, %100 : vector<8x32xf32>
    %102 = vector.extract_strided_slice %7 {offsets = [40, 0], sizes = [8, 128], strides = [1, 1]} : vector<64x128xf32> to vector<8x128xf32>
    %cst_18 = arith.constant dense<0.000000e+00> : vector<8x128xf32>
    %103 = tpu.matmul %101, %9, %cst_18 {dimension_numbers = #tpu.dot_dimension_numbers<[1], [0], [0], [1], [0, 0, 1, 1], [], []>} : vector<8x32xf32>, vector<32x128xf32>, vector<8x128xf32> -> vector<8x128xf32>
    %104 = arith.addf %102, %103 : vector<8x128xf32>
    %105 = arith.negf %104 : vector<8x128xf32>
    %106 = math.exp %105 : vector<8x128xf32>
    %cst_19 = arith.constant 1.000000e+00 : f32
    %107 = vector.broadcast %cst_19 : f32 to vector<8x128xf32>
    %108 = arith.addf %107, %106 : vector<8x128xf32>
    %109 = arith.divf %107, %108 : vector<8x128xf32>
    %110 = math.tanh %104 : vector<8x128xf32>
    %111 = vector.extract_strided_slice %109 {offsets = [0, 0], sizes = [8, 32], strides = [1, 1]} : vector<8x128xf32> to vector<8x32xf32>
    %112 = vector.extract_strided_slice %109 {offsets = [0, 32], sizes = [8, 32], strides = [1, 1]} : vector<8x128xf32> to vector<8x32xf32>
    %113 = vector.extract_strided_slice %110 {offsets = [0, 64], sizes = [8, 32], strides = [1, 1]} : vector<8x128xf32> to vector<8x32xf32>
    %114 = vector.extract_strided_slice %109 {offsets = [0, 96], sizes = [8, 32], strides = [1, 1]} : vector<8x128xf32> to vector<8x32xf32>
    %115 = arith.mulf %112, %99 : vector<8x32xf32>
    %116 = arith.mulf %111, %113 : vector<8x32xf32>
    %117 = arith.addf %115, %116 : vector<8x32xf32>
    %118 = math.tanh %117 : vector<8x32xf32>
    %119 = arith.mulf %114, %118 : vector<8x32xf32>
    %120 = vector.extract_strided_slice %7 {offsets = [48, 0], sizes = [8, 128], strides = [1, 1]} : vector<64x128xf32> to vector<8x128xf32>
    %cst_20 = arith.constant dense<0.000000e+00> : vector<8x128xf32>
    %121 = tpu.matmul %119, %9, %cst_20 {dimension_numbers = #tpu.dot_dimension_numbers<[1], [0], [0], [1], [0, 0, 1, 1], [], []>} : vector<8x32xf32>, vector<32x128xf32>, vector<8x128xf32> -> vector<8x128xf32>
    %122 = arith.addf %120, %121 : vector<8x128xf32>
    %123 = arith.negf %122 : vector<8x128xf32>
    %124 = math.exp %123 : vector<8x128xf32>
    %cst_21 = arith.constant 1.000000e+00 : f32
    %125 = vector.broadcast %cst_21 : f32 to vector<8x128xf32>
    %126 = arith.addf %125, %124 : vector<8x128xf32>
    %127 = arith.divf %125, %126 : vector<8x128xf32>
    %128 = math.tanh %122 : vector<8x128xf32>
    %129 = vector.extract_strided_slice %127 {offsets = [0, 0], sizes = [8, 32], strides = [1, 1]} : vector<8x128xf32> to vector<8x32xf32>
    %130 = vector.extract_strided_slice %127 {offsets = [0, 32], sizes = [8, 32], strides = [1, 1]} : vector<8x128xf32> to vector<8x32xf32>
    %131 = vector.extract_strided_slice %128 {offsets = [0, 64], sizes = [8, 32], strides = [1, 1]} : vector<8x128xf32> to vector<8x32xf32>
    %132 = vector.extract_strided_slice %127 {offsets = [0, 96], sizes = [8, 32], strides = [1, 1]} : vector<8x128xf32> to vector<8x32xf32>
    %133 = arith.mulf %130, %117 : vector<8x32xf32>
    %134 = arith.mulf %129, %131 : vector<8x32xf32>
    %135 = arith.addf %133, %134 : vector<8x32xf32>
    %136 = math.tanh %135 : vector<8x32xf32>
    %137 = arith.mulf %132, %136 : vector<8x32xf32>
    %138 = vector.extract_strided_slice %7 {offsets = [56, 0], sizes = [8, 128], strides = [1, 1]} : vector<64x128xf32> to vector<8x128xf32>
    %cst_22 = arith.constant dense<0.000000e+00> : vector<8x128xf32>
    %139 = tpu.matmul %137, %9, %cst_22 {dimension_numbers = #tpu.dot_dimension_numbers<[1], [0], [0], [1], [0, 0, 1, 1], [], []>} : vector<8x32xf32>, vector<32x128xf32>, vector<8x128xf32> -> vector<8x128xf32>
    %140 = arith.addf %138, %139 : vector<8x128xf32>
    %141 = arith.negf %140 : vector<8x128xf32>
    %142 = math.exp %141 : vector<8x128xf32>
    %cst_23 = arith.constant 1.000000e+00 : f32
    %143 = vector.broadcast %cst_23 : f32 to vector<8x128xf32>
    %144 = arith.addf %143, %142 : vector<8x128xf32>
    %145 = arith.divf %143, %144 : vector<8x128xf32>
    %146 = math.tanh %140 : vector<8x128xf32>
    %147 = vector.extract_strided_slice %145 {offsets = [0, 0], sizes = [8, 32], strides = [1, 1]} : vector<8x128xf32> to vector<8x32xf32>
    %148 = vector.extract_strided_slice %145 {offsets = [0, 32], sizes = [8, 32], strides = [1, 1]} : vector<8x128xf32> to vector<8x32xf32>
    %149 = vector.extract_strided_slice %146 {offsets = [0, 64], sizes = [8, 32], strides = [1, 1]} : vector<8x128xf32> to vector<8x32xf32>
    %150 = vector.extract_strided_slice %145 {offsets = [0, 96], sizes = [8, 32], strides = [1, 1]} : vector<8x128xf32> to vector<8x32xf32>
    %151 = arith.mulf %148, %135 : vector<8x32xf32>
    %152 = arith.mulf %147, %149 : vector<8x32xf32>
    %153 = arith.addf %151, %152 : vector<8x32xf32>
    %154 = math.tanh %153 : vector<8x32xf32>
    %155 = arith.mulf %150, %154 : vector<8x32xf32>
    %156 = tpu.concatenate %29, %47, %65, %83, %101, %119, %137, %155 in 0 : vector<8x32xf32>, vector<8x32xf32>, vector<8x32xf32>, vector<8x32xf32>, vector<8x32xf32>, vector<8x32xf32>, vector<8x32xf32>, vector<8x32xf32> -> vector<64x32xf32>
    %c0_24 = arith.constant 0 : index
    %c0_25 = arith.constant 0 : index
    %c0_26 = arith.constant 0 : index
    %157 = vector.load %arg3[%c0_24, %c0_25, %c0_26] : memref<1x33x128xf32, #tpu.memory_space<vmem>>, vector<1x33x128xf32>
    %158 = vector.shape_cast %157 : vector<1x33x128xf32> to vector<33x128xf32>
    %159 = vector.extract_strided_slice %158 {offsets = [0, 0], sizes = [32, 128], strides = [1, 1]} : vector<33x128xf32> to vector<32x128xf32>
    %160 = vector.extract_strided_slice %158 {offsets = [32, 0], sizes = [1, 128], strides = [1, 1]} : vector<33x128xf32> to vector<1x128xf32>
    %cst_27 = arith.constant dense<0.000000e+00> : vector<64x128xf32>
    %161 = tpu.matmul %156, %159, %cst_27 {dimension_numbers = #tpu.dot_dimension_numbers<[1], [0], [0], [1], [0, 0, 1, 1], [], []>} : vector<64x32xf32>, vector<32x128xf32>, vector<64x128xf32> -> vector<64x128xf32>
    %162 = vector.broadcast %160 : vector<1x128xf32> to vector<64x128xf32>
    %163 = arith.addf %161, %162 : vector<64x128xf32>
    %c1 = arith.constant 1 : index
    %c0_28 = arith.constant 0 : index
    %c0_29 = arith.constant 0 : index
    %164 = vector.load %arg2[%c1, %c0_28, %c0_29] : memref<2x32x128xf32, #tpu.memory_space<vmem>>, vector<1x32x128xf32>
    %165 = vector.shape_cast %164 : vector<1x32x128xf32> to vector<32x128xf32>
    %cst_30 = arith.constant 0.000000e+00 : f32
    %166 = vector.broadcast %cst_30 : f32 to vector<8x32xf32>
    %cst_31 = arith.constant 0.000000e+00 : f32
    %167 = vector.broadcast %cst_31 : f32 to vector<8x32xf32>
    %168 = vector.extract_strided_slice %163 {offsets = [0, 0], sizes = [8, 128], strides = [1, 1]} : vector<64x128xf32> to vector<8x128xf32>
    %cst_32 = arith.constant dense<0.000000e+00> : vector<8x128xf32>
    %169 = tpu.matmul %166, %165, %cst_32 {dimension_numbers = #tpu.dot_dimension_numbers<[1], [0], [0], [1], [0, 0, 1, 1], [], []>} : vector<8x32xf32>, vector<32x128xf32>, vector<8x128xf32> -> vector<8x128xf32>
    %170 = arith.addf %168, %169 : vector<8x128xf32>
    %171 = arith.negf %170 : vector<8x128xf32>
    %172 = math.exp %171 : vector<8x128xf32>
    %cst_33 = arith.constant 1.000000e+00 : f32
    %173 = vector.broadcast %cst_33 : f32 to vector<8x128xf32>
    %174 = arith.addf %173, %172 : vector<8x128xf32>
    %175 = arith.divf %173, %174 : vector<8x128xf32>
    %176 = math.tanh %170 : vector<8x128xf32>
    %177 = vector.extract_strided_slice %175 {offsets = [0, 0], sizes = [8, 32], strides = [1, 1]} : vector<8x128xf32> to vector<8x32xf32>
    %178 = vector.extract_strided_slice %175 {offsets = [0, 32], sizes = [8, 32], strides = [1, 1]} : vector<8x128xf32> to vector<8x32xf32>
    %179 = vector.extract_strided_slice %176 {offsets = [0, 64], sizes = [8, 32], strides = [1, 1]} : vector<8x128xf32> to vector<8x32xf32>
    %180 = vector.extract_strided_slice %175 {offsets = [0, 96], sizes = [8, 32], strides = [1, 1]} : vector<8x128xf32> to vector<8x32xf32>
    %181 = arith.mulf %178, %167 : vector<8x32xf32>
    %182 = arith.mulf %177, %179 : vector<8x32xf32>
    %183 = arith.addf %181, %182 : vector<8x32xf32>
    %184 = math.tanh %183 : vector<8x32xf32>
    %185 = arith.mulf %180, %184 : vector<8x32xf32>
    %186 = vector.extract_strided_slice %163 {offsets = [8, 0], sizes = [8, 128], strides = [1, 1]} : vector<64x128xf32> to vector<8x128xf32>
    %cst_34 = arith.constant dense<0.000000e+00> : vector<8x128xf32>
    %187 = tpu.matmul %185, %165, %cst_34 {dimension_numbers = #tpu.dot_dimension_numbers<[1], [0], [0], [1], [0, 0, 1, 1], [], []>} : vector<8x32xf32>, vector<32x128xf32>, vector<8x128xf32> -> vector<8x128xf32>
    %188 = arith.addf %186, %187 : vector<8x128xf32>
    %189 = arith.negf %188 : vector<8x128xf32>
    %190 = math.exp %189 : vector<8x128xf32>
    %cst_35 = arith.constant 1.000000e+00 : f32
    %191 = vector.broadcast %cst_35 : f32 to vector<8x128xf32>
    %192 = arith.addf %191, %190 : vector<8x128xf32>
    %193 = arith.divf %191, %192 : vector<8x128xf32>
    %194 = math.tanh %188 : vector<8x128xf32>
    %195 = vector.extract_strided_slice %193 {offsets = [0, 0], sizes = [8, 32], strides = [1, 1]} : vector<8x128xf32> to vector<8x32xf32>
    %196 = vector.extract_strided_slice %193 {offsets = [0, 32], sizes = [8, 32], strides = [1, 1]} : vector<8x128xf32> to vector<8x32xf32>
    %197 = vector.extract_strided_slice %194 {offsets = [0, 64], sizes = [8, 32], strides = [1, 1]} : vector<8x128xf32> to vector<8x32xf32>
    %198 = vector.extract_strided_slice %193 {offsets = [0, 96], sizes = [8, 32], strides = [1, 1]} : vector<8x128xf32> to vector<8x32xf32>
    %199 = arith.mulf %196, %183 : vector<8x32xf32>
    %200 = arith.mulf %195, %197 : vector<8x32xf32>
    %201 = arith.addf %199, %200 : vector<8x32xf32>
    %202 = math.tanh %201 : vector<8x32xf32>
    %203 = arith.mulf %198, %202 : vector<8x32xf32>
    %204 = vector.extract_strided_slice %163 {offsets = [16, 0], sizes = [8, 128], strides = [1, 1]} : vector<64x128xf32> to vector<8x128xf32>
    %cst_36 = arith.constant dense<0.000000e+00> : vector<8x128xf32>
    %205 = tpu.matmul %203, %165, %cst_36 {dimension_numbers = #tpu.dot_dimension_numbers<[1], [0], [0], [1], [0, 0, 1, 1], [], []>} : vector<8x32xf32>, vector<32x128xf32>, vector<8x128xf32> -> vector<8x128xf32>
    %206 = arith.addf %204, %205 : vector<8x128xf32>
    %207 = arith.negf %206 : vector<8x128xf32>
    %208 = math.exp %207 : vector<8x128xf32>
    %cst_37 = arith.constant 1.000000e+00 : f32
    %209 = vector.broadcast %cst_37 : f32 to vector<8x128xf32>
    %210 = arith.addf %209, %208 : vector<8x128xf32>
    %211 = arith.divf %209, %210 : vector<8x128xf32>
    %212 = math.tanh %206 : vector<8x128xf32>
    %213 = vector.extract_strided_slice %211 {offsets = [0, 0], sizes = [8, 32], strides = [1, 1]} : vector<8x128xf32> to vector<8x32xf32>
    %214 = vector.extract_strided_slice %211 {offsets = [0, 32], sizes = [8, 32], strides = [1, 1]} : vector<8x128xf32> to vector<8x32xf32>
    %215 = vector.extract_strided_slice %212 {offsets = [0, 64], sizes = [8, 32], strides = [1, 1]} : vector<8x128xf32> to vector<8x32xf32>
    %216 = vector.extract_strided_slice %211 {offsets = [0, 96], sizes = [8, 32], strides = [1, 1]} : vector<8x128xf32> to vector<8x32xf32>
    %217 = arith.mulf %214, %201 : vector<8x32xf32>
    %218 = arith.mulf %213, %215 : vector<8x32xf32>
    %219 = arith.addf %217, %218 : vector<8x32xf32>
    %220 = math.tanh %219 : vector<8x32xf32>
    %221 = arith.mulf %216, %220 : vector<8x32xf32>
    %222 = vector.extract_strided_slice %163 {offsets = [24, 0], sizes = [8, 128], strides = [1, 1]} : vector<64x128xf32> to vector<8x128xf32>
    %cst_38 = arith.constant dense<0.000000e+00> : vector<8x128xf32>
    %223 = tpu.matmul %221, %165, %cst_38 {dimension_numbers = #tpu.dot_dimension_numbers<[1], [0], [0], [1], [0, 0, 1, 1], [], []>} : vector<8x32xf32>, vector<32x128xf32>, vector<8x128xf32> -> vector<8x128xf32>
    %224 = arith.addf %222, %223 : vector<8x128xf32>
    %225 = arith.negf %224 : vector<8x128xf32>
    %226 = math.exp %225 : vector<8x128xf32>
    %cst_39 = arith.constant 1.000000e+00 : f32
    %227 = vector.broadcast %cst_39 : f32 to vector<8x128xf32>
    %228 = arith.addf %227, %226 : vector<8x128xf32>
    %229 = arith.divf %227, %228 : vector<8x128xf32>
    %230 = math.tanh %224 : vector<8x128xf32>
    %231 = vector.extract_strided_slice %229 {offsets = [0, 0], sizes = [8, 32], strides = [1, 1]} : vector<8x128xf32> to vector<8x32xf32>
    %232 = vector.extract_strided_slice %229 {offsets = [0, 32], sizes = [8, 32], strides = [1, 1]} : vector<8x128xf32> to vector<8x32xf32>
    %233 = vector.extract_strided_slice %230 {offsets = [0, 64], sizes = [8, 32], strides = [1, 1]} : vector<8x128xf32> to vector<8x32xf32>
    %234 = vector.extract_strided_slice %229 {offsets = [0, 96], sizes = [8, 32], strides = [1, 1]} : vector<8x128xf32> to vector<8x32xf32>
    %235 = arith.mulf %232, %219 : vector<8x32xf32>
    %236 = arith.mulf %231, %233 : vector<8x32xf32>
    %237 = arith.addf %235, %236 : vector<8x32xf32>
    %238 = math.tanh %237 : vector<8x32xf32>
    %239 = arith.mulf %234, %238 : vector<8x32xf32>
    %240 = vector.extract_strided_slice %163 {offsets = [32, 0], sizes = [8, 128], strides = [1, 1]} : vector<64x128xf32> to vector<8x128xf32>
    %cst_40 = arith.constant dense<0.000000e+00> : vector<8x128xf32>
    %241 = tpu.matmul %239, %165, %cst_40 {dimension_numbers = #tpu.dot_dimension_numbers<[1], [0], [0], [1], [0, 0, 1, 1], [], []>} : vector<8x32xf32>, vector<32x128xf32>, vector<8x128xf32> -> vector<8x128xf32>
    %242 = arith.addf %240, %241 : vector<8x128xf32>
    %243 = arith.negf %242 : vector<8x128xf32>
    %244 = math.exp %243 : vector<8x128xf32>
    %cst_41 = arith.constant 1.000000e+00 : f32
    %245 = vector.broadcast %cst_41 : f32 to vector<8x128xf32>
    %246 = arith.addf %245, %244 : vector<8x128xf32>
    %247 = arith.divf %245, %246 : vector<8x128xf32>
    %248 = math.tanh %242 : vector<8x128xf32>
    %249 = vector.extract_strided_slice %247 {offsets = [0, 0], sizes = [8, 32], strides = [1, 1]} : vector<8x128xf32> to vector<8x32xf32>
    %250 = vector.extract_strided_slice %247 {offsets = [0, 32], sizes = [8, 32], strides = [1, 1]} : vector<8x128xf32> to vector<8x32xf32>
    %251 = vector.extract_strided_slice %248 {offsets = [0, 64], sizes = [8, 32], strides = [1, 1]} : vector<8x128xf32> to vector<8x32xf32>
    %252 = vector.extract_strided_slice %247 {offsets = [0, 96], sizes = [8, 32], strides = [1, 1]} : vector<8x128xf32> to vector<8x32xf32>
    %253 = arith.mulf %250, %237 : vector<8x32xf32>
    %254 = arith.mulf %249, %251 : vector<8x32xf32>
    %255 = arith.addf %253, %254 : vector<8x32xf32>
    %256 = math.tanh %255 : vector<8x32xf32>
    %257 = arith.mulf %252, %256 : vector<8x32xf32>
    %258 = vector.extract_strided_slice %163 {offsets = [40, 0], sizes = [8, 128], strides = [1, 1]} : vector<64x128xf32> to vector<8x128xf32>
    %cst_42 = arith.constant dense<0.000000e+00> : vector<8x128xf32>
    %259 = tpu.matmul %257, %165, %cst_42 {dimension_numbers = #tpu.dot_dimension_numbers<[1], [0], [0], [1], [0, 0, 1, 1], [], []>} : vector<8x32xf32>, vector<32x128xf32>, vector<8x128xf32> -> vector<8x128xf32>
    %260 = arith.addf %258, %259 : vector<8x128xf32>
    %261 = arith.negf %260 : vector<8x128xf32>
    %262 = math.exp %261 : vector<8x128xf32>
    %cst_43 = arith.constant 1.000000e+00 : f32
    %263 = vector.broadcast %cst_43 : f32 to vector<8x128xf32>
    %264 = arith.addf %263, %262 : vector<8x128xf32>
    %265 = arith.divf %263, %264 : vector<8x128xf32>
    %266 = math.tanh %260 : vector<8x128xf32>
    %267 = vector.extract_strided_slice %265 {offsets = [0, 0], sizes = [8, 32], strides = [1, 1]} : vector<8x128xf32> to vector<8x32xf32>
    %268 = vector.extract_strided_slice %265 {offsets = [0, 32], sizes = [8, 32], strides = [1, 1]} : vector<8x128xf32> to vector<8x32xf32>
    %269 = vector.extract_strided_slice %266 {offsets = [0, 64], sizes = [8, 32], strides = [1, 1]} : vector<8x128xf32> to vector<8x32xf32>
    %270 = vector.extract_strided_slice %265 {offsets = [0, 96], sizes = [8, 32], strides = [1, 1]} : vector<8x128xf32> to vector<8x32xf32>
    %271 = arith.mulf %268, %255 : vector<8x32xf32>
    %272 = arith.mulf %267, %269 : vector<8x32xf32>
    %273 = arith.addf %271, %272 : vector<8x32xf32>
    %274 = math.tanh %273 : vector<8x32xf32>
    %275 = arith.mulf %270, %274 : vector<8x32xf32>
    %276 = vector.extract_strided_slice %163 {offsets = [48, 0], sizes = [8, 128], strides = [1, 1]} : vector<64x128xf32> to vector<8x128xf32>
    %cst_44 = arith.constant dense<0.000000e+00> : vector<8x128xf32>
    %277 = tpu.matmul %275, %165, %cst_44 {dimension_numbers = #tpu.dot_dimension_numbers<[1], [0], [0], [1], [0, 0, 1, 1], [], []>} : vector<8x32xf32>, vector<32x128xf32>, vector<8x128xf32> -> vector<8x128xf32>
    %278 = arith.addf %276, %277 : vector<8x128xf32>
    %279 = arith.negf %278 : vector<8x128xf32>
    %280 = math.exp %279 : vector<8x128xf32>
    %cst_45 = arith.constant 1.000000e+00 : f32
    %281 = vector.broadcast %cst_45 : f32 to vector<8x128xf32>
    %282 = arith.addf %281, %280 : vector<8x128xf32>
    %283 = arith.divf %281, %282 : vector<8x128xf32>
    %284 = math.tanh %278 : vector<8x128xf32>
    %285 = vector.extract_strided_slice %283 {offsets = [0, 0], sizes = [8, 32], strides = [1, 1]} : vector<8x128xf32> to vector<8x32xf32>
    %286 = vector.extract_strided_slice %283 {offsets = [0, 32], sizes = [8, 32], strides = [1, 1]} : vector<8x128xf32> to vector<8x32xf32>
    %287 = vector.extract_strided_slice %284 {offsets = [0, 64], sizes = [8, 32], strides = [1, 1]} : vector<8x128xf32> to vector<8x32xf32>
    %288 = vector.extract_strided_slice %283 {offsets = [0, 96], sizes = [8, 32], strides = [1, 1]} : vector<8x128xf32> to vector<8x32xf32>
    %289 = arith.mulf %286, %273 : vector<8x32xf32>
    %290 = arith.mulf %285, %287 : vector<8x32xf32>
    %291 = arith.addf %289, %290 : vector<8x32xf32>
    %292 = math.tanh %291 : vector<8x32xf32>
    %293 = arith.mulf %288, %292 : vector<8x32xf32>
    %294 = vector.extract_strided_slice %163 {offsets = [56, 0], sizes = [8, 128], strides = [1, 1]} : vector<64x128xf32> to vector<8x128xf32>
    %cst_46 = arith.constant dense<0.000000e+00> : vector<8x128xf32>
    %295 = tpu.matmul %293, %165, %cst_46 {dimension_numbers = #tpu.dot_dimension_numbers<[1], [0], [0], [1], [0, 0, 1, 1], [], []>} : vector<8x32xf32>, vector<32x128xf32>, vector<8x128xf32> -> vector<8x128xf32>
    %296 = arith.addf %294, %295 : vector<8x128xf32>
    %297 = arith.negf %296 : vector<8x128xf32>
    %298 = math.exp %297 : vector<8x128xf32>
    %cst_47 = arith.constant 1.000000e+00 : f32
    %299 = vector.broadcast %cst_47 : f32 to vector<8x128xf32>
    %300 = arith.addf %299, %298 : vector<8x128xf32>
    %301 = arith.divf %299, %300 : vector<8x128xf32>
    %302 = math.tanh %296 : vector<8x128xf32>
    %303 = vector.extract_strided_slice %301 {offsets = [0, 0], sizes = [8, 32], strides = [1, 1]} : vector<8x128xf32> to vector<8x32xf32>
    %304 = vector.extract_strided_slice %301 {offsets = [0, 32], sizes = [8, 32], strides = [1, 1]} : vector<8x128xf32> to vector<8x32xf32>
    %305 = vector.extract_strided_slice %302 {offsets = [0, 64], sizes = [8, 32], strides = [1, 1]} : vector<8x128xf32> to vector<8x32xf32>
    %306 = vector.extract_strided_slice %301 {offsets = [0, 96], sizes = [8, 32], strides = [1, 1]} : vector<8x128xf32> to vector<8x32xf32>
    %307 = arith.mulf %304, %291 : vector<8x32xf32>
    %308 = arith.mulf %303, %305 : vector<8x32xf32>
    %309 = arith.addf %307, %308 : vector<8x32xf32>
    %310 = math.tanh %309 : vector<8x32xf32>
    %311 = arith.mulf %306, %310 : vector<8x32xf32>
    %312 = tpu.concatenate %185, %203, %221, %239, %257, %275, %293, %311 in 0 : vector<8x32xf32>, vector<8x32xf32>, vector<8x32xf32>, vector<8x32xf32>, vector<8x32xf32>, vector<8x32xf32>, vector<8x32xf32>, vector<8x32xf32> -> vector<64x32xf32>
    %c0_48 = arith.constant 0 : index
    %c0_49 = arith.constant 0 : index
    %313 = vector.load %arg4[%c0_48, %c0_49] : memref<33x128xf32, #tpu.memory_space<vmem>>, vector<32x128xf32>
    %c32 = arith.constant 32 : index
    %c0_50 = arith.constant 0 : index
    %314 = vector.load %arg4[%c32, %c0_50] : memref<33x128xf32, #tpu.memory_space<vmem>>, vector<1x128xf32>
    %cst_51 = arith.constant dense<0.000000e+00> : vector<64x128xf32>
    %315 = tpu.matmul %312, %313, %cst_51 {dimension_numbers = #tpu.dot_dimension_numbers<[1], [0], [0], [1], [0, 0, 1, 1], [], []>} : vector<64x32xf32>, vector<32x128xf32>, vector<64x128xf32> -> vector<64x128xf32>
    %316 = vector.broadcast %314 : vector<1x128xf32> to vector<64x128xf32>
    %317 = arith.addf %315, %316 : vector<64x128xf32>
    %c0_52 = arith.constant 0 : index
    %c0_53 = arith.constant 0 : index
    %318 = vector.load %arg5[%c0_52, %c0_53] : memref<64x128xf32, #tpu.memory_space<vmem>>, vector<64x128xf32>
    tpu.vector_store %arg5[%c0_52, %c0_53], %317 {strides = array<i32>} : memref<64x128xf32, #tpu.memory_space<vmem>>, vector<64x128xf32>,
    return
  }
}

</mosaic_0001>

<bundles_post_ra>
// kernel: model_forward.1
= control target key start
LH: loop header
LB: loop body
LE: loop exit
PB: predicated region body
PF: predicated region fallthrough
CT: control target
= control target key end

     0   :  { %v2637_v0 = vmov 0   ;;  %vm110_vm0 = vcmask 1041408   ;;  %v2638_v6 = vmov 0.0   ;;  %vm2639_vm1 = vmmov 0   ;;  %s2641_s30 = smov 32   ;;  %s3176_s0 = inlined_call_operand.vmem [shape: s32[64,1], index: 0, kind: input, shape index: {}]   ;;  %s3177_s1 = inlined_call_operand.vmem [shape: f32[50,128], index: 1, kind: input, shape index: {}]   ;;  %s3178_s2 = inlined_call_operand.vmem [shape: f32[2,32,128], index: 2, kind: input, shape index: {}]   ;;  %s3179_s3 = inlined_call_operand.vmem [shape: f32[1,33,128], index: 3, kind: input, shape index: {}]   ;;  %s3180_s4 = inlined_call_operand.vmem [shape: f32[33,128], index: 4, kind: input, shape index: {}]   ;;  %s3181_s5 = inlined_call_operand.vmem [shape: f32[64,128], index: 5, kind: output, shape index: {}]  }
   0x1   :  { %2508 = vset.pattern.permute.xlu1 %v2637_v0  ;;  %2507 = vset.pattern.permute.xlu0 %v2637_v0  ;;  %v22_v1 = vld [vmem:[%s3176_s0 + $0x10] sm:$0xff]  ;;  %v20_v2 = vld [vmem:[%s3176_s0] sm:$0xff]  ;;  %v23_v3 = vld [vmem:[%s3176_s0 + $0x18] sm:$0xff]  ;;  %v28_v21 = vlaneseq  ;;  %vm85_vm2 = vcmask 408576   ;;  %vm223_vm11 = vcmask 261120  }
   0x2   :  { %37 = vperm.xlu1 %2508, %v22_v1   ;;  %31 = vperm.xlu0 %2507, %v20_v2   ;;  %v21_v4 = vld [vmem:[%s3176_s0 + $0x8] sm:$0xff]  ;;  %v84_v5 = vld [vmem:[%s3177_s1 + $0x30] sm:$0x3]  ;;  %v82_v8 = vld [vmem:[%s3177_s1 + $0x20] sm:$0xff] }
   0x3   :  { %2297 = vmatprep.subr.mxu1 %v2638_v6  ;;  %2260 = vmatprep.subr.msk.mxu0 %vm110_vm0, %v84_v5  ;;  %v83_v7 = vld [vmem:[%s3177_s1 + $0x28] sm:$0xff]  ;;  %v2697_v9 = vld [vmem:[%s3178_s2 + $0x18] sm:$0xff]  ;;  %v24_v11 = vld [vmem:[%s3176_s0 + $0x20] sm:$0xff]  ;;  %v29_v22 = vand.u32 127, %v28_v21 }
   0x4   :  { %2261 = vmatpush3.msk.msra.mxu0 %vm110_vm0, %v84_v5  ;;  %v25_v10 = vld [vmem:[%s3176_s0 + $0x28] sm:$0xff]  ;;  %2298 = vmatpush3.msra.mxu1 %v2697_v9  ;;  %v2709_v12 = vld [vmem:[%s3178_s2 + $0x10] sm:$0xff]  ;;  %v81_v13 = vld [vmem:[%s3177_s1 + $0x18] sm:$0xff] }
   0x5   :  { %2262 = vmatprep.subr.mxu0 %v83_v7  ;;  %2299 = vmatprep.subr.mxu1 %v2638_v6  ;;  %v27_v14 = vld [vmem:[%s3176_s0 + $0x38] sm:$0xff]  ;;  %v26_v15 = vld [vmem:[%s3176_s0 + $0x30] sm:$0xff]  ;;  %v2729_v17 = vld [vmem:[%s3178_s2 + $0x8] sm:$0xff] }
   0x6   :  { %40 = vperm.xlu1 %2508, %v23_v3   ;;  %34 = vperm.xlu0 %2507, %v21_v4   ;;  %v80_v16 = vld [vmem:[%s3177_s1 + $0x10] sm:$0xff]  ;;  %v79_v18 = vld [vmem:[%s3177_s1 + $0x8] sm:$0xff]  ;;  %v78_v19 = vld [vmem:[%s3177_s1] sm:$0xff]  ;;  %s2640_s1 = smov 64  }
   0x7   :  { %2263 = vmatpush3.msra.mxu0 %v83_v7  ;;  %2300 = vmatpush3.msra.mxu1 %v2709_v12  ;;  %v2742_v20 = vld [vmem:[%s3178_s2] sm:$0xff] }
   0x8   :  { %2264 = vmatprep.subr.mxu0 %v82_v8  ;;  %2301 = vmatprep.subr.mxu1 %v2638_v6 }
   0x9   :  { %2265 = vmatpush3.msra.mxu0 %v82_v8  ;;  %2302 = vmatpush3.msra.mxu1 %v2729_v17 }
   0xa   :  { %46 = vperm.xlu1 %2508, %v25_v10   ;;  %43 = vperm.xlu0 %2507, %v24_v11  }
   0xb   :  { %2266 = vmatprep.subr.mxu0 %v81_v13  ;;  %2303 = vmatprep.subr.mxu1 %v2638_v6 }
   0xc   :  { %2267 = vmatpush3.msra.mxu0 %v81_v13  ;;  %2304 = vmatpush3.msra.mxu1 %v2742_v20 }
   0xd   :  { %2268 = vmatprep.subr.mxu0 %v80_v16  ;;  %2305 = vmatprep.mubr.msk.f32.mxu1 %vm2639_vm1, %v2638_v6 }
   0xe   :  { %52 = vperm.xlu1 %2508, %v27_v14   ;;  %49 = vperm.xlu0 %2507, %v26_v15  }
   0xf   :  { %2269 = vmatpush3.msra.mxu0 %v80_v16  ;;  %2308 = vmatprep.subr.mxu1 %v2638_v6 }
  0x10   :  { %2270 = vmatprep.subr.mxu0 %v79_v18 }
  0x11   :  { %2271 = vmatpush3.msra.mxu0 %v79_v18 }
  0x12   :  { %2272 = vmatprep.subr.mxu0 %v78_v19 }
  0x13   :  { %2273 = vmatpush3.msra.mxu0 %v78_v19 }
  0x14   :  { %2286 = vmatprep.subr.mxu0 %v2638_v6 }
  0x7d   :  { %v38_v23 = vpop.permute.xlu1 %37  ;;  %v32_v24 = vpop.permute.xlu0 %31 }
  0x7e   :  { %vm54_vm3 = vcmp.eq.s32.totalorder %v29_v22, %v32_v24  ;;  %vm56_vm4 = vcmp.eq.s32.totalorder %v29_v22, %v38_v23 }
  0x7f   :  { %v2072_v25 = vsel %vm54_vm3, 1.0, %v2638_v6  ;;  %v2074_v28 = vsel %vm56_vm4, 1.0, %v2638_v6 }
  0x80   :  { %2274 = vmatprep.mubr.msk.f32.mxu0 %vm85_vm2, %v2072_v25 }
  0x81   :  { %v41_v26 = vpop.permute.xlu1 %40  ;;  %v35_v27 = vpop.permute.xlu0 %34 }
  0x82   :  { %vm55_vm5 = vcmp.eq.s32.totalorder %v29_v22, %v35_v27  ;;  %vm57_vm6 = vcmp.eq.s32.totalorder %v29_v22, %v41_v26 }
  0x83   :  { %v2073_v29 = vsel %vm55_vm5, 1.0, %v2638_v6  ;;  %v2075_v32 = vsel %vm57_vm6, 1.0, %v2638_v6 }
  0x84   :  { %2275 = vmatmul.mubr.msk.f32.vlgmr.msra.gmra.mxu0 %vm85_vm2, %v2073_v29 }
  0x85   :  { %2287 = vmatpush3.msra.mxu0 %v2697_v9  ;;  %v47_v30 = vpop.permute.xlu1 %46  ;;  %2277 = vmatprep.mubr.msk.f32.mxu0 %vm85_vm2, %v2074_v28  ;;  %v44_v31 = vpop.permute.xlu0 %43 }
  0x86   :  { %vm58_vm7 = vcmp.eq.s32.totalorder %v29_v22, %v44_v31  ;;  %2288 = vmatprep.subr.mxu0 %v2638_v6  ;;  %vm59_vm8 = vcmp.eq.s32.totalorder %v29_v22, %v47_v30 }
  0x87   :  { %v2076_v33 = vsel %vm58_vm7, 1.0, %v2638_v6  ;;  %2289 = vmatpush3.msra.mxu0 %v2709_v12  ;;  %v2077_v36 = vsel %vm59_vm8, 1.0, %v2638_v6 }
  0x88   :  { %2278 = vmatmul.mubr.msk.f32.gmra.mxu0 %vm85_vm2, %v2075_v32  ;;  %2290 = vmatprep.subr.mxu0 %v2638_v6 }
  0x89   :  { %v53_v34 = vpop.permute.xlu1 %52  ;;  %2280 = vmatprep.mubr.msk.f32.mxu0 %vm85_vm2, %v2076_v33  ;;  %v50_v35 = vpop.permute.xlu0 %49  ;;  %2291 = vmatpush3.msra.mxu0 %v2729_v17 }
  0x8a   :  { %vm60_vm9 = vcmp.eq.s32.totalorder %v29_v22, %v50_v35  ;;  %2292 = vmatprep.subr.mxu0 %v2638_v6  ;;  %vm61_vm10 = vcmp.eq.s32.totalorder %v29_v22, %v53_v34 }
  0x8b   :  { %v2078_v37 = vsel %vm60_vm9, 1.0, %v2638_v6  ;;  %2293 = vmatpush3.msra.mxu0 %v2742_v20  ;;  %v2079_v38 = vsel %vm61_vm10, 1.0, %v2638_v6 }
  0x8c   :  { %2281 = vmatmul.mubr.msk.f32.gmra.mxu0 %vm85_vm2, %v2077_v36  ;;  %2319 = vmatprep.subr.mxu0 %v2638_v6 }
  0x8d   :  { %2283 = vmatprep.mubr.msk.f32.mxu0 %vm85_vm2, %v2078_v37 }
  0x90   :  { %2284 = vmatmul.mubr.msk.f32.gmra.mxu0 %vm85_vm2, %v2079_v38 }
  0x91   :  { %2294 = vmatprep.mubr.msk.f32.mxu0 %vm2639_vm1, %v2638_v6 }
  0x94   :  { %2295 = vmatmul.mubr.f32.vlgmr.msra.gmra.mxu0 %v2638_v6 }
  0x95   :  { %2320 = vmatpush3.msra.mxu0 %v2697_v9  ;;  %2327 = vmatprep.mubr.msk.f32.mxu0 %vm2639_vm1, %v2638_v6 }
  0x96   :  { %2321 = vmatprep.subr.mxu0 %v2638_v6 }
  0x97   :  { %2322 = vmatpush3.msra.mxu0 %v2709_v12 }
  0x98   :  { %2323 = vmatprep.subr.mxu0 %v2638_v6 }
  0x99   :  { %2324 = vmatpush3.msra.mxu0 %v2729_v17 }
  0x9a   :  { %2325 = vmatprep.subr.mxu0 %v2638_v6 }
  0x9b   :  { %2326 = vmatpush3.msra.mxu0 %v2742_v20 }
  0x9c   :  { %2341 = vmatprep.subr.mxu0 %v2638_v6 }
 0x144   :  { %v2276_v39 = vpop.f32.mrf.mxu0 }
 0x146   :  { %v180_v40 = vpop.f32.mrf.mxu0 }
 0x148   :  { %v2786_v41 = vpop.f32.mrf.mxu0 }
 0x14a   :  { %v2788_v42 = vpop.f32.mrf.mxu0 }
 0x14c   :  { %v2790_v43 = vpop.f32.mrf.mxu0 }
 0x14e   :  { %v2792_v44 = vpop.f32.mrf.mxu0 }
 0x150   :  { %v2794_v45 = vpop.f32.mrf.mxu0 }
 0x152   :  { %v2796_v46 = vpop.f32.mrf.mxu0 }
 0x154   :  { %v293_v47 = vpop.f32.mrf.mxu0 }
 0x155   :  { %v297_v48 = vadd.f32 %v293_v47, %v180_v40 }
 0x156   :  { %v2296_v49 = vpop.f32.mrf.mxu0 }
 0x157   :  { %2509 = vtanh.f32 %v297_v48  ;;  %v2089_v51 = vmul.f32 -1.442695, %v297_v48 }
 0x159   :  { %2511 = vpow2.f32 %v2089_v51 }
 0x164   :  { %v2510_v50 = vpop.eup %2509 }
 0x165   :  { %307 = vrot.lane.b32.xlu0 %v2510_v50, %s2640_s1 }
 0x166   :  { %v2512_v52 = vpop.eup %2511 }
 0x167   :  { %v301_v53 = vadd.f32 1.0, %v2512_v52 }
 0x169   :  { %2513 = vrcp.f32 %v301_v53 }
 0x176   :  { %v2514_v54 = vpop.eup %2513 }
 0x177   :  { %v305_v57 = vmul.f32 0.0, %v2514_v54 }
 0x1d7   :  { %v308_v55 = vpop.permute.xlu0 %307 }
 0x1d8   :  { %v310_v56 = vmul.f32 %v2514_v54, %v308_v55 }
 0x1da   :  { %312 = vrot.lane.b32.xlu1 %v310_v56, %s2641_s30 }
 0x24c   :  { %v313_v58 = vpop.permute.xlu1 %312 }
 0x24d   :  { %v315_v59 = vadd.f32 %v313_v58, %v305_v57 }
 0x24f   :  { %2515 = vtanh.f32 %v315_v59 }
 0x25c   :  { %v2516_v60 = vpop.eup %2515 }
 0x25d   :  { %318 = vrot.lane.b32.xlu0 %v2516_v60, %s2640_s1 }
 0x2cf   :  { %v319_v61 = vpop.permute.xlu0 %318 }
 0x2d0   :  { %v321_v62 = vmul.f32 %v2514_v54, %v319_v61 }
 0x2d2   :  { %323 = vrot.lane.b32.xlu1 %v321_v62, %s2641_s30 }
 0x344   :  { %v2802_v63 = vpop.permute.xlu1 %323 }
 0x345   :  { %2306 = vmatmul.mubr.msk.f32.vlgmr.msra.gmra.mxu1 %vm223_vm11, %v2802_v63 }
 0x346   :  { %2309 = vmatpush3.msra.mxu1 %v2697_v9  ;;  %2316 = vmatprep.mubr.msk.f32.mxu1 %vm2639_vm1, %v2638_v6 }
 0x347   :  { %2310 = vmatprep.subr.mxu1 %v2638_v6 }
 0x348   :  { %2311 = vmatpush3.msra.mxu1 %v2709_v12 }
 0x349   :  { %2312 = vmatprep.subr.mxu1 %v2638_v6 }
 0x34a   :  { %2313 = vmatpush3.msra.mxu1 %v2729_v17 }
 0x34b   :  { %2314 = vmatprep.subr.mxu1 %v2638_v6 }
 0x34c   :  { %2315 = vmatpush3.msra.mxu1 %v2742_v20 }
 0x34d   :  { %2330 = vmatprep.subr.mxu1 %v2638_v6 }
 0x405   :  { %v393_v0 = vpop.f32.mrf.mxu1 }
 0x406   :  { %v397_v1 = vadd.f32 %v2276_v39, %v393_v0 }
 0x407   :  { %v2307_v2 = vpop.f32.mrf.mxu1 }
 0x408   :  { %2517 = vtanh.f32 %v397_v1  ;;  %v2091_v4 = vmul.f32 -1.442695, %v397_v1 }
 0x40a   :  { %2519 = vpow2.f32 %v2091_v4 }
 0x415   :  { %v2518_v3 = vpop.eup %2517 }
 0x416   :  { %407 = vrot.lane.b32.xlu0 %v2518_v3, %s2640_s1 }
 0x417   :  { %v2520_v5 = vpop.eup %2519 }
 0x418   :  { %v401_v7 = vadd.f32 1.0, %v2520_v5 }
 0x41a   :  { %2521 = vrcp.f32 %v401_v7 }
 0x427   :  { %v2522_v8 = vpop.eup %2521 }
 0x428   :  { %v405_v13 = vmul.f32 %v2522_v8, %v315_v59 }
 0x488   :  { %v408_v10 = vpop.permute.xlu0 %407 }
 0x489   :  { %v410_v11 = vmul.f32 %v2522_v8, %v408_v10 }
 0x48b   :  { %412 = vrot.lane.b32.xlu1 %v410_v11, %s2641_s30 }
 0x4fd   :  { %v413_v14 = vpop.permute.xlu1 %412 }
 0x4fe   :  { %v415_v15 = vadd.f32 %v413_v14, %v405_v13 }
 0x500   :  { %2523 = vtanh.f32 %v415_v15 }
 0x50d   :  { %v2524_v16 = vpop.eup %2523 }
 0x50e   :  { %418 = vrot.lane.b32.xlu0 %v2524_v16, %s2640_s1 }
 0x580   :  { %v419_v18 = vpop.permute.xlu0 %418 }
 0x581   :  { %v421_v19 = vmul.f32 %v2522_v8, %v419_v18 }
 0x583   :  { %423 = vrot.lane.b32.xlu1 %v421_v19, %s2641_s30 }
 0x5f5   :  { %v2820_v21 = vpop.permute.xlu1 %423 }
 0x5f6   :  { %2317 = vmatmul.mubr.msk.f32.vlgmr.msra.gmra.mxu1 %vm223_vm11, %v2820_v21 }
 0x5f7   :  { %2331 = vmatpush3.msra.mxu1 %v2697_v9  ;;  %2338 = vmatprep.mubr.msk.f32.mxu1 %vm2639_vm1, %v2638_v6 }
 0x5f8   :  { %2332 = vmatprep.subr.mxu1 %v2638_v6 }
 0x5f9   :  { %2333 = vmatpush3.msra.mxu1 %v2709_v12 }
 0x5fa   :  { %2334 = vmatprep.subr.mxu1 %v2638_v6 }
 0x5fb   :  { %2335 = vmatpush3.msra.mxu1 %v2729_v17 }
 0x5fc   :  { %2336 = vmatprep.subr.mxu1 %v2638_v6 }
 0x5fd   :  { %2337 = vmatpush3.msra.mxu1 %v2742_v20 }
 0x5fe   :  { %2352 = vmatprep.subr.mxu1 %v2638_v6 }
 0x6b6   :  { %v493_v22 = vpop.f32.mrf.mxu1 }
 0x6b7   :  { %v497_v23 = vadd.f32 %v493_v22, %v2788_v42 }
 0x6b8   :  { %v2318_v24 = vpop.f32.mrf.mxu1 }
 0x6b9   :  { %2525 = vtanh.f32 %v497_v23  ;;  %v2093_v26 = vmul.f32 -1.442695, %v497_v23 }
 0x6bb   :  { %2527 = vpow2.f32 %v2093_v26 }
 0x6c6   :  { %v2526_v25 = vpop.eup %2525 }
 0x6c7   :  { %507 = vrot.lane.b32.xlu0 %v2526_v25, %s2640_s1 }
 0x6c8   :  { %v2528_v27 = vpop.eup %2527 }
 0x6c9   :  { %v501_v28 = vadd.f32 1.0, %v2528_v27 }
 0x6cb   :  { %2529 = vrcp.f32 %v501_v28 }
 0x6d8   :  { %v2530_v29 = vpop.eup %2529 }
 0x6d9   :  { %v505_v32 = vmul.f32 %v2530_v29, %v415_v15 }
 0x739   :  { %v508_v30 = vpop.permute.xlu0 %507 }
 0x73a   :  { %v510_v31 = vmul.f32 %v2530_v29, %v508_v30 }
 0x73c   :  { %512 = vrot.lane.b32.xlu1 %v510_v31, %s2641_s30 }
 0x7ae   :  { %v513_v33 = vpop.permute.xlu1 %512 }
 0x7af   :  { %v515_v34 = vadd.f32 %v513_v33, %v505_v32  ;;  %v1024_v32 = vld [vmem:[%s3179_s3 + $0x10] sm:$0xff]  ;;  %v1023_v33 = vld [vmem:[%s3179_s3 + $0x8] sm:$0xff] }
 0x7b1   :  { %2531 = vtanh.f32 %v515_v34 }
 0x7be   :  { %v2532_v35 = vpop.eup %2531 }
 0x7bf   :  { %518 = vrot.lane.b32.xlu0 %v2532_v35, %s2640_s1 }
 0x831   :  { %v519_v36 = vpop.permute.xlu0 %518 }
 0x832   :  { %v521_v37 = vmul.f32 %v2530_v29, %v519_v36 }
 0x834   :  { %523 = vrot.lane.b32.xlu1 %v521_v37, %s2641_s30 }
 0x8a6   :  { %v2839_v38 = vpop.permute.xlu1 %523 }
 0x8a7   :  { %2328 = vmatmul.mubr.msk.f32.vlgmr.msra.gmra.mxu0 %vm223_vm11, %v2839_v38 }
 0x8a8   :  { %2342 = vmatpush3.msra.mxu0 %v2697_v9  ;;  %2349 = vmatprep.mubr.msk.f32.mxu0 %vm2639_vm1, %v2638_v6 }
 0x8a9   :  { %2343 = vmatprep.subr.mxu0 %v2638_v6 }
 0x8aa   :  { %2344 = vmatpush3.msra.mxu0 %v2709_v12 }
 0x8ab   :  { %2345 = vmatprep.subr.mxu0 %v2638_v6 }
 0x8ac   :  { %2346 = vmatpush3.msra.mxu0 %v2729_v17 }
 0x8ad   :  { %2347 = vmatprep.subr.mxu0 %v2638_v6 }
 0x8ae   :  { %2348 = vmatpush3.msra.mxu0 %v2742_v20 }
 0x8af   :  { %2363 = vmatprep.subr.mxu0 %v2638_v6 }
 0x967   :  { %v593_v39 = vpop.f32.mrf.mxu0 }
 0x968   :  { %v597_v40 = vadd.f32 %v2786_v41, %v593_v39 }
 0x969   :  { %v2329_v42 = vpop.f32.mrf.mxu0 }
 0x96a   :  { %2533 = vtanh.f32 %v597_v40  ;;  %v2095_v48 = vmul.f32 -1.442695, %v597_v40 }
 0x96c   :  { %2535 = vpow2.f32 %v2095_v48 }
 0x977   :  { %v2534_v47 = vpop.eup %2533 }
 0x978   :  { %607 = vrot.lane.b32.xlu0 %v2534_v47, %s2640_s1 }
 0x979   :  { %v2536_v49 = vpop.eup %2535 }
 0x97a   :  { %v601_v50 = vadd.f32 1.0, %v2536_v49 }
 0x97c   :  { %2537 = vrcp.f32 %v601_v50 }
 0x989   :  { %v2538_v51 = vpop.eup %2537 }
 0x98a   :  { %v605_v54 = vmul.f32 %v2538_v51, %v515_v34  ;;  %v1022_v34 = vld [vmem:[%s3179_s3] sm:$0xff] }
 0x9ea   :  { %v608_v52 = vpop.permute.xlu0 %607 }
 0x9eb   :  { %v610_v53 = vmul.f32 %v2538_v51, %v608_v52  ;;  %v2932_v52 = vld [vmem:[%s3178_s2 + $0x30] sm:$0xff] }
 0x9ed   :  { %612 = vrot.lane.b32.xlu1 %v610_v53, %s2641_s30  ;;  %v2939_v53 = vld [vmem:[%s3178_s2 + $0x28] sm:$0xff] }
 0xa5f   :  { %v613_v55 = vpop.permute.xlu1 %612 }
 0xa60   :  { %v615_v56 = vadd.f32 %v613_v55, %v605_v54  ;;  %v2946_v54 = vld [vmem:[%s3178_s2 + $0x20] sm:$0xff] }
 0xa62   :  { %2539 = vtanh.f32 %v615_v56 }
 0xa6f   :  { %v2540_v41 = vpop.eup %2539 }
 0xa70   :  { %618 = vrot.lane.b32.xlu0 %v2540_v41, %s2640_s1 }
 0xae2   :  { %v619_v57 = vpop.permute.xlu0 %618 }
 0xae3   :  { %v621_v58 = vmul.f32 %v2538_v51, %v619_v57  ;;  %v2926_v51 = vld [vmem:[%s3178_s2 + $0x38] sm:$0xff] }
 0xae5   :  { %623 = vrot.lane.b32.xlu1 %v621_v58, %s2641_s30 }
 0xb57   :  { %v2858_v59 = vpop.permute.xlu1 %623 }
 0xb58   :  { %2339 = vmatmul.mubr.msk.f32.vlgmr.msra.gmra.mxu1 %vm223_vm11, %v2858_v59 }
 0xb59   :  { %2353 = vmatpush3.msra.mxu1 %v2697_v9  ;;  %2360 = vmatprep.mubr.msk.f32.mxu1 %vm2639_vm1, %v2638_v6 }
 0xb5a   :  { %2354 = vmatprep.subr.mxu1 %v2638_v6 }
 0xb5b   :  { %2355 = vmatpush3.msra.mxu1 %v2709_v12 }
 0xb5c   :  { %2356 = vmatprep.subr.mxu1 %v2638_v6 }
 0xb5d   :  { %2357 = vmatpush3.msra.mxu1 %v2729_v17 }
 0xb5e   :  { %2358 = vmatprep.subr.mxu1 %v2638_v6 }
 0xb5f   :  { %2359 = vmatpush3.msra.mxu1 %v2742_v20 }
 0xc18   :  { %v693_v60 = vpop.f32.mrf.mxu1 }
 0xc19   :  { %v697_v61 = vadd.f32 %v693_v60, %v2792_v44 }
 0xc1a   :  { %v2340_v62 = vpop.f32.mrf.mxu1 }
 0xc1b   :  { %2541 = vtanh.f32 %v697_v61  ;;  %v2097_v1 = vmul.f32 -1.442695, %v697_v61  ;;  %v2980_v61 = vld [vmem:[%s3179_s3 + $0x20] ss:$0 sm:$0xff] }
 0xc1d   :  { %2543 = vpow2.f32 %v2097_v1 }
 0xc28   :  { %v2542_v0 = vpop.eup %2541 }
 0xc29   :  { %707 = vrot.lane.b32.xlu0 %v2542_v0, %s2640_s1 }
 0xc2a   :  { %v2544_v2 = vpop.eup %2543 }
 0xc2b   :  { %v701_v3 = vadd.f32 1.0, %v2544_v2 }
 0xc2d   :  { %2545 = vrcp.f32 %v701_v3 }
 0xc3a   :  { %v2546_v4 = vpop.eup %2545 }
 0xc3b   :  { %v705_v8 = vmul.f32 %v2546_v4, %v615_v56 }
 0xc9b   :  { %v708_v5 = vpop.permute.xlu0 %707 }
 0xc9c   :  { %v710_v7 = vmul.f32 %v2546_v4, %v708_v5 }
 0xc9e   :  { %712 = vrot.lane.b32.xlu1 %v710_v7, %s2641_s30 }
 0xd10   :  { %v713_v10 = vpop.permute.xlu1 %712 }
 0xd11   :  { %v715_v11 = vadd.f32 %v713_v10, %v705_v8 }
 0xd13   :  { %2547 = vtanh.f32 %v715_v11 }
 0xd20   :  { %v2548_v44 = vpop.eup %2547 }
 0xd21   :  { %718 = vrot.lane.b32.xlu0 %v2548_v44, %s2640_s1 }
 0xd93   :  { %v719_v13 = vpop.permute.xlu0 %718 }
 0xd94   :  { %v721_v14 = vmul.f32 %v2546_v4, %v719_v13 }
 0xd96   :  { %723 = vrot.lane.b32.xlu1 %v721_v14, %s2641_s30 }
 0xe08   :  { %v724_v15 = vpop.permute.xlu1 %723 }
 0xe09   :  { %2350 = vmatmul.mubr.msk.f32.vlgmr.msra.gmra.mxu0 %vm223_vm11, %v724_v15 }
 0xe0a   :  { %2364 = vmatpush3.msra.mxu0 %v2697_v9  ;;  %2371 = vmatprep.mubr.msk.f32.mxu0 %vm2639_vm1, %v2638_v6 }
 0xe0b   :  { %2365 = vmatprep.subr.mxu0 %v2638_v6 }
 0xe0c   :  { %2366 = vmatpush3.msra.mxu0 %v2709_v12 }
 0xe0d   :  { %2367 = vmatprep.subr.mxu0 %v2638_v6 }
 0xe0e   :  { %2368 = vmatpush3.msra.mxu0 %v2729_v17 }
 0xe0f   :  { %2369 = vmatprep.subr.mxu0 %v2638_v6 }
 0xe10   :  { %2370 = vmatpush3.msra.mxu0 %v2742_v20 }
 0xe11   :  { %2394 = vmatprep.subr.mxu0 %v2638_v6 }
 0xec9   :  { %v793_v16 = vpop.f32.mrf.mxu0 }
 0xeca   :  { %v797_v9 = vadd.f32 %v2790_v43, %v793_v16  ;;  %v1025_v43 = vld [vmem:[%s3179_s3 + $0x18] sm:$0xff] }
 0xecb   :  { %v2351_v18 = vpop.f32.mrf.mxu0  ;;  %2374 = vmatprep.subr.mxu1 %v1025_v43 }
 0xecc   :  { %2549 = vtanh.f32 %v797_v9  ;;  %v2099_v22 = vmul.f32 -1.442695, %v797_v9 }
 0xece   :  { %2551 = vpow2.f32 %v2099_v22 }
 0xed9   :  { %v2550_v19 = vpop.eup %2549 }
 0xeda   :  { %807 = vrot.lane.b32.xlu0 %v2550_v19, %s2640_s1 }
 0xedb   :  { %v2552_v12 = vpop.eup %2551 }
 0xedc   :  { %v801_v23 = vadd.f32 1.0, %v2552_v12 }
 0xede   :  { %2553 = vrcp.f32 %v801_v23 }
 0xeeb   :  { %v2554_v17 = vpop.eup %2553 }
 0xeec   :  { %v805_v20 = vmul.f32 %v2554_v17, %v715_v11 }
 0xf4c   :  { %v808_v24 = vpop.permute.xlu0 %807 }
 0xf4d   :  { %v810_v25 = vmul.f32 %v2554_v17, %v808_v24 }
 0xf4f   :  { %812 = vrot.lane.b32.xlu1 %v810_v25, %s2641_s30 }
 0xfc1   :  { %v813_v26 = vpop.permute.xlu1 %812 }
 0xfc2   :  { %v815_v27 = vadd.f32 %v813_v26, %v805_v20 }
 0xfc4   :  { %2555 = vtanh.f32 %v815_v27 }
 0xfd1   :  { %v2556_v28 = vpop.eup %2555 }
 0xfd2   :  { %818 = vrot.lane.b32.xlu0 %v2556_v28, %s2640_s1 }
0x1044   :  { %v819_v29 = vpop.permute.xlu0 %818 }
0x1045   :  { %v821_v30 = vmul.f32 %v2554_v17, %v819_v29 }
0x1047   :  { %823 = vrot.lane.b32.xlu1 %v821_v30, %s2641_s30 }
0x10b9   :  { %v824_v31 = vpop.permute.xlu1 %823 }
0x10ba   :  { %2361 = vmatmul.mubr.msk.f32.vlgmr.msra.gmra.mxu1 %vm223_vm11, %v824_v31 }
0x10bb   :  { %2375 = vmatpush3.msra.mxu1 %v1025_v43  ;;  %2382 = vmatprep.mubr.msk.f32.mxu1 %vm223_vm11, %v2802_v63 }
0x10bc   :  { %2376 = vmatprep.subr.mxu1 %v1024_v32 }
0x10bd   :  { %2377 = vmatpush3.msra.mxu1 %v1024_v32 }
0x10be   :  { %2378 = vmatprep.subr.mxu1 %v1023_v33 }
0x10bf   :  { %2379 = vmatpush3.msra.mxu1 %v1023_v33 }
0x10c0   :  { %2380 = vmatprep.subr.mxu1 %v1022_v34 }
0x10c1   :  { %2381 = vmatpush3.msra.mxu1 %v1022_v34 }
0x10c2   :  { %2383 = vmatmul.mubr.msk.f32.vlgmr.msra.gmra.mxu1 %vm223_vm11, %v2820_v21  ;;  %2416 = vmatprep.subr.mxu1 %v2638_v6 }
0x10c3   :  { %2385 = vmatprep.mubr.msk.f32.mxu1 %vm223_vm11, %v2839_v38  ;;  %2417 = vmatpush3.msra.mxu1 %v2926_v51 }
0x10c4   :  { %2418 = vmatprep.subr.mxu1 %v2638_v6 }
0x10c5   :  { %2419 = vmatpush3.msra.mxu1 %v2932_v52 }
0x10c6   :  { %2386 = vmatmul.mubr.msk.f32.gmra.mxu1 %vm223_vm11, %v2858_v59  ;;  %2420 = vmatprep.subr.mxu1 %v2638_v6 }
0x10c7   :  { %2388 = vmatprep.mubr.msk.f32.mxu1 %vm223_vm11, %v724_v15  ;;  %2421 = vmatpush3.msra.mxu1 %v2939_v53 }
0x10c8   :  { %2422 = vmatprep.subr.mxu1 %v2638_v6 }
0x10c9   :  { %2423 = vmatpush3.msra.mxu1 %v2946_v54 }
0x10ca   :  { %2389 = vmatmul.mubr.msk.f32.gmra.mxu1 %vm223_vm11, %v824_v31  ;;  %2438 = vmatprep.subr.mxu1 %v2638_v6 }
0x117a   :  { %v893_v63 = vpop.f32.mrf.mxu1 }
0x117b   :  { %v897_v35 = vadd.f32 %v893_v63, %v2796_v46 }
0x117c   :  { %v2362_v36 = vpop.f32.mrf.mxu1 }
0x117d   :  { %2557 = vtanh.f32 %v897_v35  ;;  %v2101_v21 = vmul.f32 -1.442695, %v897_v35 }
0x117f   :  { %2559 = vpow2.f32 %v2101_v21 }
0x1182   :  { %v2975_v57 = vpop.f32.mrf.mxu1 }
0x1183   :  { %v1108_v30 = vadd.f32 %v2975_v57, %v2980_v61 }
0x1184   :  { %v1102_v60 = vpop.f32.mrf.mxu1 }
0x1185   :  { %v1103_v62 = vadd.f32 %v2980_v61, %v1102_v60 }
0x118a   :  { %v2558_v37 = vpop.eup %2557 }
0x118b   :  { %907 = vrot.lane.b32.xlu0 %v2558_v37, %s2640_s1 }
0x118c   :  { %v2560_v39 = vpop.eup %2559 }
0x118d   :  { %v901_v40 = vadd.f32 1.0, %v2560_v39 }
0x118f   :  { %2561 = vrcp.f32 %v901_v40 }
0x119c   :  { %v2562_v38 = vpop.eup %2561 }
0x119d   :  { %v905_v48 = vmul.f32 %v2562_v38, %v815_v27 }
0x11fd   :  { %v908_v42 = vpop.permute.xlu0 %907 }
0x11fe   :  { %v910_v47 = vmul.f32 %v2562_v38, %v908_v42 }
0x1200   :  { %912 = vrot.lane.b32.xlu1 %v910_v47, %s2641_s30 }
0x1272   :  { %v913_v49 = vpop.permute.xlu1 %912 }
0x1273   :  { %v2919_v50 = vadd.f32 %v913_v49, %v905_v48 }
0x1275   :  { %2563 = vtanh.f32 %v2919_v50 }
0x1282   :  { %v2564_v46 = vpop.eup %2563 }
0x1283   :  { %918 = vrot.lane.b32.xlu0 %v2564_v46, %s2640_s1 }
0x12f5   :  { %v919_v55 = vpop.permute.xlu0 %918 }
0x12f6   :  { %v921_v56 = vmul.f32 %v2562_v38, %v919_v55  ;;  %v2387_v55 = vpop.f32.mrf.mxu1 }
0x12f8   :  { %923 = vrot.lane.b32.xlu1 %v921_v56, %s2641_s30  ;;  %v1112_v56 = vpop.f32.mrf.mxu1 }
0x12f9   :  { %v1113_v60 = vadd.f32 %v2980_v61, %v1112_v56 }
0x136a   :  { %v924_v41 = vpop.permute.xlu1 %923 }
0x136b   :  { %2372 = vmatmul.mubr.msk.f32.vlgmr.msra.gmra.mxu0 %vm223_vm11, %v924_v41  ;;  %2391 = vmatprep.mubr.msk.f32.mxu1 %vm223_vm11, %v924_v41  ;;  %v3030_v41 = vpop.f32.mrf.mxu1 }
0x136c   :  { %2395 = vmatpush3.msra.mxu0 %v2926_v51  ;;  %2402 = vmatprep.mubr.msk.f32.mxu0 %vm2639_vm1, %v2638_v6 }
0x136d   :  { %2396 = vmatprep.subr.mxu0 %v2638_v6  ;;  %v3032_v57 = vpop.f32.mrf.mxu1 }
0x136e   :  { %2397 = vmatpush3.msra.mxu0 %v2932_v52 }
0x136f   :  { %2398 = vmatprep.subr.mxu0 %v2638_v6 }
0x1370   :  { %2399 = vmatpush3.msra.mxu0 %v2939_v53 }
0x1371   :  { %2400 = vmatprep.subr.mxu0 %v2638_v6 }
0x1372   :  { %2401 = vmatpush3.msra.mxu0 %v2946_v54 }
0x1373   :  { %2403 = vmatmul.mubr.f32.vlgmr.msra.gmra.mxu0 %v2638_v6  ;;  %2405 = vmatprep.subr.mxu0 %v2638_v6 }
0x1374   :  { %2406 = vmatpush3.msra.mxu0 %v2926_v51  ;;  %2413 = vmatprep.mubr.msk.f32.mxu0 %vm2639_vm1, %v2638_v6 }
0x1375   :  { %2407 = vmatprep.subr.mxu0 %v2638_v6 }
0x1376   :  { %2408 = vmatpush3.msra.mxu0 %v2932_v52 }
0x1377   :  { %2409 = vmatprep.subr.mxu0 %v2638_v6 }
0x1378   :  { %2410 = vmatpush3.msra.mxu0 %v2939_v53 }
0x1379   :  { %2411 = vmatprep.subr.mxu0 %v2638_v6 }
0x137a   :  { %2412 = vmatpush3.msra.mxu0 %v2946_v54 }
0x137b   :  { %2427 = vmatprep.subr.mxu0 %v2638_v6 }
0x142b   :  { %v993_v58 = vpop.f32.mrf.mxu0 }
0x142c   :  { %v997_v15 = vadd.f32 %v2794_v45, %v993_v58 }
0x142d   :  { %v2373_v59 = vpop.f32.mrf.mxu0 }
0x142e   :  { %v2103_v18 = vmul.f32 -1.442695, %v997_v15 }
0x1433   :  { %v1212_v0 = vpop.f32.mrf.mxu0 }
0x1434   :  { %v1216_v1 = vadd.f32 %v1212_v0, %v1103_v62 }
0x1435   :  { %v2404_v2 = vpop.f32.mrf.mxu0 }
0x1436   :  { %2565 = vtanh.f32 %v1216_v1  ;;  %v2117_v4 = vmul.f32 -1.442695, %v1216_v1 }
0x1438   :  { %2567 = vpow2.f32 %v2117_v4 }
0x1443   :  { %v2566_v3 = vpop.eup %2565 }
0x1444   :  { %1226 = vrot.lane.b32.xlu0 %v2566_v3, %s2640_s1 }
0x1445   :  { %v2568_v5 = vpop.eup %2567 }
0x1446   :  { %v1220_v7 = vadd.f32 1.0, %v2568_v5 }
0x1448   :  { %2569 = vrcp.f32 %v1220_v7 }
0x1455   :  { %v2570_v8 = vpop.eup %2569 }
0x1456   :  { %v1224_v44 = vmul.f32 0.0, %v2570_v8 }
0x14b6   :  { %v1227_v10 = vpop.permute.xlu0 %1226 }
0x14b7   :  { %v1229_v11 = vmul.f32 %v2570_v8, %v1227_v10 }
0x14b9   :  { %1231 = vrot.lane.b32.xlu1 %v1229_v11, %s2641_s30 }
0x152b   :  { %v1232_v13 = vpop.permute.xlu1 %1231 }
0x152c   :  { %v1234_v14 = vadd.f32 %v1232_v13, %v1224_v44 }
0x152e   :  { %2571 = vtanh.f32 %v1234_v14 }
0x152f   :  { %2573 = vtanh.f32 %v997_v15 }
0x1530   :  { %2575 = vpow2.f32 %v2103_v18  ;;  %v1118_v18 = vadd.f32 %v2387_v55, %v2980_v61 }
0x153b   :  { %v2572_v16 = vpop.eup %2571 }
0x153c   :  { %1237 = vrot.lane.b32.xlu0 %v2572_v16, %s2640_s1  ;;  %v2574_v9 = vpop.eup %2573 }
0x153d   :  { %v2576_v19 = vpop.eup %2575 }
0x153e   :  { %v1001_v22 = vadd.f32 1.0, %v2576_v19 }
0x1540   :  { %1007 = vrot.lane.b32.xlu0 %v2574_v9, %s2640_s1  ;;  %2577 = vrcp.f32 %v1001_v22 }
0x154d   :  { %v2578_v17 = vpop.eup %2577 }
0x154e   :  { %v1005_v20 = vmul.f32 %v2578_v17, %v2919_v50 }
0x15ae   :  { %v1238_v12 = vpop.permute.xlu0 %1237 }
0x15af   :  { %v1240_v23 = vmul.f32 %v2570_v8, %v1238_v12 }
0x15b1   :  { %1242 = vrot.lane.b32.xlu1 %v1240_v23, %s2641_s30 }
0x15b2   :  { %v1008_v24 = vpop.permute.xlu0 %1007 }
0x15b3   :  { %v1010_v45 = vmul.f32 %v2578_v17, %v1008_v24 }
0x15b5   :  { %1012 = vrot.lane.b32.xlu0 %v1010_v45, %s2641_s30 }
0x1623   :  { %v2990_v25 = vpop.permute.xlu1 %1242 }
0x1624   :  { %2414 = vmatmul.mubr.msk.f32.vlgmr.msra.gmra.mxu0 %vm223_vm11, %v2990_v25 }
0x1625   :  { %2428 = vmatpush3.msra.mxu0 %v2926_v51  ;;  %2435 = vmatprep.mubr.msk.f32.mxu0 %vm2639_vm1, %v2638_v6 }
0x1626   :  { %2429 = vmatprep.subr.mxu0 %v2638_v6 }
0x1627   :  { %v1013_v26 = vpop.permute.xlu0 %1012  ;;  %2430 = vmatpush3.msra.mxu0 %v2932_v52 }
0x1628   :  { %v1015_v27 = vadd.f32 %v1013_v26, %v1005_v20  ;;  %2431 = vmatprep.subr.mxu0 %v2638_v6 }
0x1629   :  { %2432 = vmatpush3.msra.mxu0 %v2939_v53 }
0x162a   :  { %2579 = vtanh.f32 %v1015_v27  ;;  %2433 = vmatprep.subr.mxu0 %v2638_v6 }
0x162b   :  { %2434 = vmatpush3.msra.mxu0 %v2946_v54 }
0x162c   :  { %2449 = vmatprep.subr.mxu0 %v2638_v6 }
0x1637   :  { %v2580_v43 = vpop.eup %2579 }
0x1638   :  { %1018 = vrot.lane.b32.xlu0 %v2580_v43, %s2640_s1 }
0x16aa   :  { %v1019_v28 = vpop.permute.xlu0 %1018 }
0x16ab   :  { %v1021_v29 = vmul.f32 %v2578_v17, %v1019_v28 }
0x16ad   :  { %1032 = vrot.lane.b32.xlu0 %v1021_v29, %s2641_s30 }
0x16e4   :  { %v1312_v31 = vpop.f32.mrf.mxu0 }
0x16e5   :  { %v1316_v32 = vadd.f32 %v1312_v31, %v1108_v30 }
0x16e6   :  { %v2415_v33 = vpop.f32.mrf.mxu0 }
0x16e7   :  { %2581 = vtanh.f32 %v1316_v32  ;;  %v2119_v35 = vmul.f32 -1.442695, %v1316_v32 }
0x16e9   :  { %2583 = vpow2.f32 %v2119_v35 }
0x16f4   :  { %v2582_v34 = vpop.eup %2581 }
0x16f5   :  { %1326 = vrot.lane.b32.xlu1 %v2582_v34, %s2640_s1  ;;  %v1123_v34 = vadd.f32 %v2980_v61, %v3032_v57 }
0x16f6   :  { %v2584_v36 = vpop.eup %2583 }
0x16f7   :  { %v1320_v37 = vadd.f32 1.0, %v2584_v36 }
0x16f9   :  { %2585 = vrcp.f32 %v1320_v37 }
0x1706   :  { %v2586_v21 = vpop.eup %2585 }
0x1707   :  { %v1324_v38 = vmul.f32 %v2586_v21, %v1234_v14 }
0x171f   :  { %v1033_v63 = vpop.permute.xlu0 %1032 }
0x1720   :  { %2392 = vmatmul.mubr.msk.f32.gmra.mxu1 %vm223_vm11, %v1033_v63 }
0x1721   :  { %2424 = vmatprep.mubr.msk.f32.mxu1 %vm2639_vm1, %v2638_v6 }
0x1767   :  { %v1327_v39 = vpop.permute.xlu1 %1326 }
0x1768   :  { %v1329_v40 = vmul.f32 %v2586_v21, %v1327_v39 }
0x176a   :  { %1331 = vrot.lane.b32.xlu1 %v1329_v40, %s2641_s30 }
0x17dc   :  { %v1332_v42 = vpop.permute.xlu1 %1331 }
0x17dd   :  { %v1334_v47 = vadd.f32 %v1332_v42, %v1324_v38 }
0x17df   :  { %2587 = vtanh.f32 %v1334_v47 }
0x17e0   :  { %v3034_v58 = vpop.f32.mrf.mxu1 }
0x17e2   :  { %v3036_v59 = vpop.f32.mrf.mxu1 }
0x17ec   :  { %v2588_v48 = vpop.eup %2587 }
0x17ed   :  { %1337 = vrot.lane.b32.xlu1 %v2588_v48, %s2640_s1 }
0x185f   :  { %v1338_v49 = vpop.permute.xlu1 %1337 }
0x1860   :  { %v1340_v50 = vmul.f32 %v2586_v21, %v1338_v49 }
0x1862   :  { %1342 = vrot.lane.b32.xlu1 %v1340_v50, %s2641_s30 }
0x18d4   :  { %v3016_v46 = vpop.permute.xlu1 %1342 }
0x18d5   :  { %2425 = vmatmul.mubr.msk.f32.vlgmr.msra.gmra.mxu1 %vm223_vm11, %v3016_v46 }
0x18d6   :  { %2439 = vmatpush3.msra.mxu1 %v2926_v51  ;;  %2446 = vmatprep.mubr.msk.f32.mxu1 %vm2639_vm1, %v2638_v6 }
0x18d7   :  { %2440 = vmatprep.subr.mxu1 %v2638_v6 }
0x18d8   :  { %2441 = vmatpush3.msra.mxu1 %v2932_v52 }
0x18d9   :  { %2442 = vmatprep.subr.mxu1 %v2638_v6 }
0x18da   :  { %2443 = vmatpush3.msra.mxu1 %v2939_v53 }
0x18db   :  { %2444 = vmatprep.subr.mxu1 %v2638_v6 }
0x18dc   :  { %2445 = vmatpush3.msra.mxu1 %v2946_v54 }
0x18dd   :  { %2460 = vmatprep.subr.mxu1 %v2638_v6 }
0x1995   :  { %v1412_v62 = vpop.f32.mrf.mxu1 }
0x1996   :  { %v1416_v0 = vadd.f32 %v1412_v62, %v1113_v60  ;;  %v1128_v62 = vadd.f32 %v3030_v41, %v2980_v61 }
0x1997   :  { %v2426_v1 = vpop.f32.mrf.mxu1 }
0x1998   :  { %2589 = vtanh.f32 %v1416_v0  ;;  %v2121_v3 = vmul.f32 -1.442695, %v1416_v0 }
0x199a   :  { %2591 = vpow2.f32 %v2121_v3 }
0x19a5   :  { %v2590_v2 = vpop.eup %2589 }
0x19a6   :  { %1426 = vrot.lane.b32.xlu0 %v2590_v2, %s2640_s1 }
0x19a7   :  { %v2592_v4 = vpop.eup %2591 }
0x19a8   :  { %v1420_v5 = vadd.f32 1.0, %v2592_v4 }
0x19aa   :  { %2593 = vrcp.f32 %v1420_v5 }
0x19b7   :  { %v2594_v7 = vpop.eup %2593 }
0x19b8   :  { %v1424_v11 = vmul.f32 %v2594_v7, %v1334_v47 }
0x1a18   :  { %v1427_v8 = vpop.permute.xlu0 %1426 }
0x1a19   :  { %v1429_v10 = vmul.f32 %v2594_v7, %v1427_v8  ;;  %v1944_v8 = vld [vmem:[%s3180_s4 + $0x18] sm:$0xff] }
0x1a1b   :  { %1431 = vrot.lane.b32.xlu1 %v1429_v10, %s2641_s30 }
0x1a8d   :  { %v1432_v44 = vpop.permute.xlu1 %1431 }
0x1a8e   :  { %v1434_v13 = vadd.f32 %v1432_v44, %v1424_v11 }
0x1a90   :  { %2595 = vtanh.f32 %v1434_v13 }
0x1a9d   :  { %v2596_v14 = vpop.eup %2595 }
0x1a9e   :  { %1437 = vrot.lane.b32.xlu0 %v2596_v14, %s2640_s1  ;;  %v1943_v14 = vld [vmem:[%s3180_s4 + $0x10] sm:$0xff] }
0x1b10   :  { %v1438_v15 = vpop.permute.xlu0 %1437 }
0x1b11   :  { %v1440_v16 = vmul.f32 %v2594_v7, %v1438_v15  ;;  %v1942_v15 = vld [vmem:[%s3180_s4 + $0x8] sm:$0xff] }
0x1b13   :  { %1442 = vrot.lane.b32.xlu1 %v1440_v16, %s2641_s30  ;;  %v1941_v16 = vld [vmem:[%s3180_s4] sm:$0xff] }
0x1b85   :  { %v3043_v9 = vpop.permute.xlu1 %1442 }
0x1b86   :  { %2436 = vmatmul.mubr.msk.f32.vlgmr.msra.gmra.mxu0 %vm223_vm11, %v3043_v9 }
0x1b87   :  { %2450 = vmatpush3.msra.mxu0 %v2926_v51  ;;  %2457 = vmatprep.mubr.msk.f32.mxu0 %vm2639_vm1, %v2638_v6 }
0x1b88   :  { %2451 = vmatprep.subr.mxu0 %v2638_v6 }
0x1b89   :  { %2452 = vmatpush3.msra.mxu0 %v2932_v52 }
0x1b8a   :  { %2453 = vmatprep.subr.mxu0 %v2638_v6 }
0x1b8b   :  { %2454 = vmatpush3.msra.mxu0 %v2939_v53 }
0x1b8c   :  { %2455 = vmatprep.subr.mxu0 %v2638_v6 }
0x1b8d   :  { %2456 = vmatpush3.msra.mxu0 %v2946_v54 }
0x1b8e   :  { %2471 = vmatprep.subr.mxu0 %v2638_v6 }
0x1c46   :  { %v1512_v19 = vpop.f32.mrf.mxu0 }
0x1c47   :  { %v1516_v22 = vadd.f32 %v1512_v19, %v1118_v18 }
0x1c48   :  { %v2437_v12 = vpop.f32.mrf.mxu0 }
0x1c49   :  { %2597 = vtanh.f32 %v1516_v22  ;;  %v2123_v17 = vmul.f32 -1.442695, %v1516_v22 }
0x1c4b   :  { %2599 = vpow2.f32 %v2123_v17 }
0x1c56   :  { %v2598_v23 = vpop.eup %2597 }
0x1c57   :  { %1526 = vrot.lane.b32.xlu0 %v2598_v23, %s2640_s1 }
0x1c58   :  { %v2600_v24 = vpop.eup %2599 }
0x1c59   :  { %v1520_v45 = vadd.f32 1.0, %v2600_v24 }
0x1c5b   :  { %2601 = vrcp.f32 %v1520_v45 }
0x1c68   :  { %v2602_v20 = vpop.eup %2601 }
0x1c69   :  { %v1524_v43 = vmul.f32 %v2602_v20, %v1434_v13 }
0x1cc9   :  { %v1527_v26 = vpop.permute.xlu0 %1526 }
0x1cca   :  { %v1529_v27 = vmul.f32 %v2602_v20, %v1527_v26 }
0x1ccc   :  { %1531 = vrot.lane.b32.xlu1 %v1529_v27, %s2641_s30 }
0x1d3e   :  { %v1532_v28 = vpop.permute.xlu1 %1531 }
0x1d3f   :  { %v1534_v29 = vadd.f32 %v1532_v28, %v1524_v43 }
0x1d41   :  { %2603 = vtanh.f32 %v1534_v29 }
0x1d4e   :  { %v2604_v30 = vpop.eup %2603 }
0x1d4f   :  { %1537 = vrot.lane.b32.xlu0 %v2604_v30, %s2640_s1 }
0x1dc1   :  { %v1538_v31 = vpop.permute.xlu0 %1537 }
0x1dc2   :  { %v1540_v32 = vmul.f32 %v2602_v20, %v1538_v31 }
0x1dc4   :  { %1542 = vrot.lane.b32.xlu1 %v1540_v32, %s2641_s30 }
0x1e36   :  { %v3062_v33 = vpop.permute.xlu1 %1542 }
0x1e37   :  { %2447 = vmatmul.mubr.msk.f32.vlgmr.msra.gmra.mxu1 %vm223_vm11, %v3062_v33 }
0x1e38   :  { %2461 = vmatpush3.msra.mxu1 %v2926_v51  ;;  %2468 = vmatprep.mubr.msk.f32.mxu1 %vm2639_vm1, %v2638_v6 }
0x1e39   :  { %2462 = vmatprep.subr.mxu1 %v2638_v6 }
0x1e3a   :  { %2463 = vmatpush3.msra.mxu1 %v2932_v52 }
0x1e3b   :  { %2464 = vmatprep.subr.mxu1 %v2638_v6 }
0x1e3c   :  { %2465 = vmatpush3.msra.mxu1 %v2939_v53 }
0x1e3d   :  { %2466 = vmatprep.subr.mxu1 %v2638_v6 }
0x1e3e   :  { %2467 = vmatpush3.msra.mxu1 %v2946_v54 }
0x1e3f   :  { %2482 = vmatprep.subr.mxu1 %v1944_v8 }
0x1ef7   :  { %v1612_v63 = vpop.f32.mrf.mxu1 }
0x1ef8   :  { %v1616_v35 = vadd.f32 %v1612_v63, %v1123_v34 }
0x1ef9   :  { %v2448_v36 = vpop.f32.mrf.mxu1 }
0x1efa   :  { %2605 = vtanh.f32 %v1616_v35  ;;  %v2125_v21 = vmul.f32 -1.442695, %v1616_v35 }
0x1efc   :  { %2607 = vpow2.f32 %v2125_v21 }
0x1f07   :  { %v2606_v37 = vpop.eup %2605 }
0x1f08   :  { %1626 = vrot.lane.b32.xlu0 %v2606_v37, %s2640_s1 }
0x1f09   :  { %v2608_v39 = vpop.eup %2607 }
0x1f0a   :  { %v1620_v40 = vadd.f32 1.0, %v2608_v39 }
0x1f0c   :  { %2609 = vrcp.f32 %v1620_v40 }
0x1f19   :  { %v2610_v38 = vpop.eup %2609 }
0x1f1a   :  { %v1624_v48 = vmul.f32 %v2610_v38, %v1534_v29 }
0x1f7a   :  { %v1627_v42 = vpop.permute.xlu0 %1626 }
0x1f7b   :  { %v1629_v47 = vmul.f32 %v2610_v38, %v1627_v42  ;;  %v1138_v42 = vadd.f32 %v3034_v58, %v2980_v61 }
0x1f7d   :  { %1631 = vrot.lane.b32.xlu1 %v1629_v47, %s2641_s30 }
0x1fef   :  { %v1632_v49 = vpop.permute.xlu1 %1631 }
0x1ff0   :  { %v1634_v50 = vadd.f32 %v1632_v49, %v1624_v48 }
0x1ff2   :  { %2611 = vtanh.f32 %v1634_v50 }
0x1fff   :  { %v2612_v55 = vpop.eup %2611 }
0x2000   :  { %1637 = vrot.lane.b32.xlu0 %v2612_v55, %s2640_s1 }
0x2072   :  { %v1638_v56 = vpop.permute.xlu0 %1637 }
0x2073   :  { %v1640_v57 = vmul.f32 %v2610_v38, %v1638_v56 }
0x2075   :  { %1642 = vrot.lane.b32.xlu1 %v1640_v57, %s2641_s30 }
0x20e7   :  { %v1643_v60 = vpop.permute.xlu1 %1642 }
0x20e8   :  { %2458 = vmatmul.mubr.msk.f32.vlgmr.msra.gmra.mxu0 %vm223_vm11, %v1643_v60 }
0x20e9   :  { %2472 = vmatpush3.msra.mxu0 %v2926_v51  ;;  %2479 = vmatprep.mubr.msk.f32.mxu0 %vm2639_vm1, %v2638_v6 }
0x20ea   :  { %2473 = vmatprep.subr.mxu0 %v2638_v6 }
0x20eb   :  { %2474 = vmatpush3.msra.mxu0 %v2932_v52 }
0x20ec   :  { %2475 = vmatprep.subr.mxu0 %v2638_v6 }
0x20ed   :  { %2476 = vmatpush3.msra.mxu0 %v2939_v53 }
0x20ee   :  { %2477 = vmatprep.subr.mxu0 %v2638_v6 }
0x20ef   :  { %2478 = vmatpush3.msra.mxu0 %v2946_v54 }
0x21a8   :  { %v1712_v0 = vpop.f32.mrf.mxu0 }
0x21a9   :  { %v1716_v51 = vadd.f32 %v1712_v0, %v1128_v62 }
0x21aa   :  { %v2459_v1 = vpop.f32.mrf.mxu0 }
0x21ab   :  { %2613 = vtanh.f32 %v1716_v51  ;;  %v2127_v3 = vmul.f32 -1.442695, %v1716_v51 }
0x21ad   :  { %2615 = vpow2.f32 %v2127_v3 }
0x21b8   :  { %v2614_v2 = vpop.eup %2613 }
0x21b9   :  { %1726 = vrot.lane.b32.xlu0 %v2614_v2, %s2640_s1 }
0x21ba   :  { %v2616_v52 = vpop.eup %2615 }
0x21bb   :  { %v1720_v4 = vadd.f32 1.0, %v2616_v52 }
0x21bd   :  { %2617 = vrcp.f32 %v1720_v4 }
0x21ca   :  { %v2618_v53 = vpop.eup %2617 }
0x21cb   :  { %v1724_v54 = vmul.f32 %v2618_v53, %v1634_v50 }
0x222b   :  { %v1727_v5 = vpop.permute.xlu0 %1726 }
0x222c   :  { %v1729_v6 = vmul.f32 %v2618_v53, %v1727_v5 }
0x222e   :  { %1731 = vrot.lane.b32.xlu1 %v1729_v6, %s2641_s30 }
0x22a0   :  { %v1732_v7 = vpop.permute.xlu1 %1731 }
0x22a1   :  { %v3095_v41 = vadd.f32 %v1732_v7, %v1724_v54 }
0x22a3   :  { %2619 = vtanh.f32 %v3095_v41 }
0x22b0   :  { %v2620_v10 = vpop.eup %2619 }
0x22b1   :  { %1737 = vrot.lane.b32.xlu0 %v2620_v10, %s2640_s1 }
0x2323   :  { %v1738_v11 = vpop.permute.xlu0 %1737 }
0x2324   :  { %v1740_v44 = vmul.f32 %v2618_v53, %v1738_v11 }
0x2326   :  { %1742 = vrot.lane.b32.xlu1 %v1740_v44, %s2641_s30 }
0x2398   :  { %v1743_v13 = vpop.permute.xlu1 %1742 }
0x2399   :  { %2469 = vmatmul.mubr.msk.f32.vlgmr.msra.gmra.mxu1 %vm223_vm11, %v1743_v13 }
0x239a   :  { %2483 = vmatpush3.msra.mxu1 %v1944_v8  ;;  %2490 = vmatprep.mubr.msk.f32.mxu1 %vm223_vm11, %v2990_v25  ;;  %v1133_v25 = vadd.f32 %v2980_v61, %v3036_v59 }
0x239b   :  { %2484 = vmatprep.subr.mxu1 %v1943_v14 }
0x239c   :  { %2485 = vmatpush3.msra.mxu1 %v1943_v14 }
0x239d   :  { %2486 = vmatprep.subr.mxu1 %v1942_v15 }
0x239e   :  { %2487 = vmatpush3.msra.mxu1 %v1942_v15 }
0x239f   :  { %2488 = vmatprep.subr.mxu1 %v1941_v16 }
0x23a0   :  { %2489 = vmatpush3.msra.mxu1 %v1941_v16 }
0x23a1   :  { %2491 = vmatmul.mubr.msk.f32.vlgmr.msra.gmra.mxu1 %vm223_vm11, %v3016_v46  ;;  %v3128_v46 = vld [vmem:[%s3180_s4 + $0x20] ss:$0 sm:$0xff] }
0x23a2   :  { %2493 = vmatprep.mubr.msk.f32.mxu1 %vm223_vm11, %v3043_v9 }
0x23a5   :  { %2494 = vmatmul.mubr.msk.f32.gmra.mxu1 %vm223_vm11, %v3062_v33 }
0x23a6   :  { %2496 = vmatprep.mubr.msk.f32.mxu1 %vm223_vm11, %v1643_v60 }
0x23a9   :  { %2497 = vmatmul.mubr.msk.f32.gmra.mxu1 %vm223_vm11, %v1743_v13 }
0x2459   :  { %v1812_v18 = vpop.f32.mrf.mxu1 }
0x245a   :  { %v1816_v19 = vadd.f32 %v1812_v18, %v1133_v25 }
0x245b   :  { %v2470_v22 = vpop.f32.mrf.mxu1 }
0x245c   :  { %2621 = vtanh.f32 %v1816_v19  ;;  %v2129_v30 = vmul.f32 -1.442695, %v1816_v19 }
0x245e   :  { %2623 = vpow2.f32 %v2129_v30 }
0x2461   :  { %v2492_v9 = vpop.f32.mrf.mxu1 }
0x2462   :  { %v2027_v12 = vadd.f32 %v2492_v9, %v3128_v46 }
0x2463   :  { %v2021_v23 = vpop.f32.mrf.mxu1 }
0x2464   :  { %2061 = vst [vmem:[%s3181_s5 + $0x8] sm:$0xff] %v2027_v12  ;;  %v2022_v17 = vadd.f32 %v3128_v46, %v2021_v23 }
0x2465   :  { %v2495_v59 = vpop.f32.mrf.mxu1 }
0x2466   :  { %2060 = vst [vmem:[%s3181_s5] sm:$0xff] %v2022_v17  ;;  %v2037_v24 = vadd.f32 %v2495_v59, %v3128_v46 }
0x2467   :  { %v2031_v45 = vpop.f32.mrf.mxu1 }
0x2468   :  { %2063 = vst [vmem:[%s3181_s5 + $0x18] sm:$0xff] %v2037_v24  ;;  %v2032_v20 = vadd.f32 %v3128_v46, %v2031_v45 }
0x2469   :  { %v2622_v26 = vpop.eup %2621  ;;  %v2498_v27 = vpop.f32.mrf.mxu1 }
0x246a   :  { %2062 = vst [vmem:[%s3181_s5 + $0x10] sm:$0xff] %v2032_v20  ;;  %v2047_v43 = vadd.f32 %v2498_v27, %v3128_v46  ;;  %1826 = vrot.lane.b32.xlu0 %v2622_v26, %s2640_s1 }
0x246b   :  { %v2041_v28 = vpop.f32.mrf.mxu1  ;;  %v2624_v31 = vpop.eup %2623 }
0x246c   :  { %2065 = vst [vmem:[%s3181_s5 + $0x28] sm:$0xff] %v2047_v43  ;;  %v2042_v29 = vadd.f32 %v3128_v46, %v2041_v28  ;;  %v1820_v32 = vadd.f32 1.0, %v2624_v31 }
0x246e   :  { %2064 = vst [vmem:[%s3181_s5 + $0x20] sm:$0xff] %v2042_v29  ;;  %2625 = vrcp.f32 %v1820_v32 }
0x247b   :  { %v2626_v33 = vpop.eup %2625 }
0x247c   :  { %v1824_v35 = vmul.f32 %v2626_v33, %v3095_v41 }
0x24dc   :  { %v1827_v34 = vpop.permute.xlu0 %1826 }
0x24dd   :  { %v1829_v63 = vmul.f32 %v2626_v33, %v1827_v34 }
0x24df   :  { %1831 = vrot.lane.b32.xlu1 %v1829_v63, %s2641_s30 }
0x2551   :  { %v1832_v36 = vpop.permute.xlu1 %1831 }
0x2552   :  { %v1834_v37 = vadd.f32 %v1832_v36, %v1824_v35 }
0x2554   :  { %2627 = vtanh.f32 %v1834_v37 }
0x2561   :  { %v2628_v21 = vpop.eup %2627 }
0x2562   :  { %1837 = vrot.lane.b32.xlu0 %v2628_v21, %s2640_s1 }
0x25d4   :  { %v1838_v39 = vpop.permute.xlu0 %1837 }
0x25d5   :  { %v1840_v40 = vmul.f32 %v2626_v33, %v1838_v39 }
0x25d7   :  { %1842 = vrot.lane.b32.xlu1 %v1840_v40, %s2641_s30 }
0x2649   :  { %v1843_v38 = vpop.permute.xlu1 %1842 }
0x264a   :  { %2480 = vmatmul.mubr.msk.f32.vlgmr.msra.gmra.mxu0 %vm223_vm11, %v1843_v38  ;;  %2499 = vmatprep.mubr.msk.f32.mxu1 %vm223_vm11, %v1843_v38 }
0x270a   :  { %v1912_v47 = vpop.f32.mrf.mxu0 }
0x270b   :  { %v1916_v48 = vadd.f32 %v1912_v47, %v1138_v42 }
0x270c   :  { %v2481_v49 = vpop.f32.mrf.mxu0 }
0x270d   :  { %2629 = vtanh.f32 %v1916_v48  ;;  %v2131_v55 = vmul.f32 -1.442695, %v1916_v48 }
0x270f   :  { %2631 = vpow2.f32 %v2131_v55 }
0x271a   :  { %v2630_v50 = vpop.eup %2629 }
0x271b   :  { %1926 = vrot.lane.b32.xlu0 %v2630_v50, %s2640_s1 }
0x271c   :  { %v2632_v56 = vpop.eup %2631 }
0x271d   :  { %v1920_v57 = vadd.f32 1.0, %v2632_v56 }
0x271f   :  { %2633 = vrcp.f32 %v1920_v57 }
0x272c   :  { %v2634_v60 = vpop.eup %2633 }
0x272d   :  { %v1924_v51 = vmul.f32 %v2634_v60, %v1834_v37 }
0x278d   :  { %v1927_v62 = vpop.permute.xlu0 %1926 }
0x278e   :  { %v1929_v0 = vmul.f32 %v2634_v60, %v1927_v62 }
0x2790   :  { %1931 = vrot.lane.b32.xlu1 %v1929_v0, %s2641_s30 }
0x2802   :  { %v1932_v1 = vpop.permute.xlu1 %1931 }
0x2803   :  { %v1934_v61 = vadd.f32 %v1932_v1, %v1924_v51 }
0x2805   :  { %2635 = vtanh.f32 %v1934_v61 }
0x2812   :  { %v2636_v58 = vpop.eup %2635 }
0x2813   :  { %1937 = vrot.lane.b32.xlu0 %v2636_v58, %s2640_s1 }
0x2885   :  { %v1938_v2 = vpop.permute.xlu0 %1937 }
0x2886   :  { %v1940_v3 = vmul.f32 %v2634_v60, %v1938_v2 }
0x2888   :  { %1951 = vrot.lane.b32.xlu1 %v1940_v3, %s2641_s30 }
0x28fa   :  { %v1952_v52 = vpop.permute.xlu1 %1951 }
0x28fb   :  { %2500 = vmatmul.mubr.msk.f32.gmra.mxu1 %vm223_vm11, %v1952_v52 }
0x29bb   :  { %v2501_v4 = vpop.f32.mrf.mxu1 }
0x29bc   :  { %v2057_v53 = vadd.f32 %v2501_v4, %v3128_v46 }
0x29bd   :  { %v2051_v5 = vpop.f32.mrf.mxu1 }
0x29be   :  { %2067 = vst [vmem:[%s3181_s5 + $0x38] sm:$0xff] %v2057_v53  ;;  %v2052_v6 = vadd.f32 %v3128_v46, %v2051_v5 }
0x29c0   :  { %2066 = vst [vmem:[%s3181_s5 + $0x30] sm:$0xff] %v2052_v6 }

</bundles_post_ra>
